<compile_context>
chip_gen: v6e
topology: v6e:2x2x1
jax: 0.10.0
libtpu: 0.0.40
codegen_flags: <defaults>
</compile_context>

<pallas_src>
import functools

import jax
import jax.numpy as jnp
from jax.experimental import pallas as pl
from jax.experimental.pallas import tpu as pltpu


# ------------------------------ fused kernel ---------------------------------

def _fused_lstm_fc_kernel(*refs, num_layers):
    """Fused forward: [LSTM x num_layers] -> Dropout(eval: identity) -> Linear.

    refs = (x_ref,
            wih0_t, whh0_t, bias0, ..., wih{L-1}_t, whh{L-1}_t, bias{L-1},
            wfc_t, bfc,
            o_ref)
    Shapes: x (B,T,D); wih_t (D_in,4H); whh_t (H,4H); bias (1,4H);
            wfc_t (H,O); bfc (1,O); o (B,O).
    """
    x_ref = refs[0]
    lstm_refs = refs[1:1 + 3 * num_layers]
    wfc_ref = refs[1 + 3 * num_layers]
    bfc_ref = refs[2 + 3 * num_layers]
    o_ref = refs[-1]

    B, T, D = x_ref.shape
    f32 = jnp.float32

    # ---- load all weights/biases exactly once (unrolled loops don't CSE ref reads) ----
    wih = [lstm_refs[3 * l + 0][...] for l in range(num_layers)]   # (D_in, 4H)
    whh = [lstm_refs[3 * l + 1][...] for l in range(num_layers)]   # (H, 4H)
    bias = [lstm_refs[3 * l + 2][...] for l in range(num_layers)]  # (1, 4H)
    H = whh[0].shape[0]

    # Per-step bias broadcast for layers >= 1, hoisted (no per-iter broadcast_in_dim).
    bias_b = [None] + [jnp.broadcast_to(bias[l], (B, 4 * H))
                       for l in range(1, num_layers)]

    # ---- layer-0 input projection hoisted for ALL timesteps, repacked time-major ----
    # One (B*T, D) x (D, 4H) matmul + one tiny (B,T,4H)->(T,B,4H) transpose, both
    # off the recurrence chain; gx0[t] in the loop is a leading-axis address offset.
    gx0 = (jnp.dot(x_ref[...].reshape(B * T, D), wih[0],
                   preferred_element_type=f32) + bias[0]).reshape(B, T, 4 * H)
    gx0 = jnp.transpose(gx0, (1, 0, 2))                         # (T, B, 4H)

    def cell(pre, c_prev):
        # 3 EUP pushes per step: one full-vreg sigmoid over the lane-dense (B, 4H)
        # pre-activation (sliced for i/f/o; g quarter wasted), tanh(g), tanh(c).
        sig = jax.nn.sigmoid(pre)
        g_g = jnp.tanh(pre[:, 2 * H:3 * H])
        i_g = sig[:, 0 * H:1 * H]
        f_g = sig[:, 1 * H:2 * H]
        o_g = sig[:, 3 * H:4 * H]
        c_new = f_g * c_prev + i_g * g_g
        h_new = o_g * jnp.tanh(c_new)
        return h_new, c_new

    h = [jnp.zeros((B, H), f32) for _ in range(num_layers)]
    c = [jnp.zeros((B, H), f32) for _ in range(num_layers)]

    # ---- wavefront over s = t + layer: layer l handles timestep t = s - l --------
    # Layers iterate high -> low inside a wavefront step so h[l-1] still holds its
    # value from wavefront step s-1 (i.e. time t = s - l), which is exactly the
    # input layer l needs.  Fully unrolled (T=8, L=2 -> 16 cell steps).
    for s in range(T + num_layers - 1):
        for layer in reversed(range(num_layers)):
            t = s - layer
            if not (0 <= t < T):
                continue
            if layer == 0:
                x_gate = gx0[t]                                 # static leading-axis slice
            else:
                x_gate = (jnp.dot(h[layer - 1], wih[layer],
                                  preferred_element_type=f32) + bias_b[layer])
            pre = x_gate + jnp.dot(h[layer], whh[layer],
                                   preferred_element_type=f32)
            h[layer], c[layer] = cell(pre, c[layer])

    # Dropout(p=0.3) is identity in eval/inference mode.
    # TODO(synk): training-mode dropout (pltpu.prng_random_bits mask) not applied.
    o_ref[...] = (jnp.dot(h[num_layers - 1], wfc_ref[...],
                          preferred_element_type=f32) + bfc_ref[...])


# ------------------------------ wrapper ---------------------------------------

def pack_params(params):
    """ONE-TIME repack into kernel layout.  Call at setup, NOT per forward call:
    keeps transposes / bias fusion out of the hot path (no extra per-call XLA ops)."""
    packed = []
    for (w_ih, w_hh, b_ih, b_hh) in params["lstm"]:
        packed += [jnp.transpose(w_ih),              # (D_in, 4H)
                   jnp.transpose(w_hh),              # (H, 4H)
                   (b_ih + b_hh)[None, :]]           # (1, 4H) fused bias
    packed += [jnp.transpose(params["fc_w"]),        # (H, O)
               params["fc_b"][None, :]]              # (1, O)
    return tuple(packed)


@jax.jit
def multi_step_lstm_forward(packed, x_btd):
    """packed: pack_params() output; x_btd: (B, T, input_size) f32 -> (B, output_size)."""
    x = x_btd.astype(jnp.float32)
    B = x.shape[0]
    num_layers = (len(packed) - 2) // 3
    out_size = packed[-1].shape[-1]

    kernel = functools.partial(_fused_lstm_fc_kernel, num_layers=num_layers)
    vmem = pl.BlockSpec(memory_space=pltpu.MemorySpace.VMEM)
    return pl.pallas_call(
        kernel,
        out_shape=jax.ShapeDtypeStruct((B, out_size), jnp.float32),
        in_specs=[vmem] * (1 + len(packed)),
        out_specs=vmem,
        # Working set ~100 KB; small explicit cap leaves headroom for co-scheduled
        # fusions and stays well under v7x's 32 MiB scoped / 64 MiB physical VMEM.
        compiler_params=pltpu.CompilerParams(vmem_limit_bytes=4 * 1024 * 1024),
    )(x, *packed)


# --------------------------- parameter init ------------------------------------

def init_params(key, input_size, hidden_size, num_layers, output_size):
    """Deterministic init mirroring PyTorch's U(-1/sqrt(H), 1/sqrt(H)), PyTorch layout."""
    k = 1.0 / jnp.sqrt(jnp.float32(hidden_size))
    params = {"lstm": []}
    for layer in range(num_layers):
        d_in = input_size if layer == 0 else hidden_size
        key, k1, k2, k3, k4 = jax.random.split(key, 5)
        w_ih = jax.random.uniform(k1, (4 * hidden_size, d_in), jnp.float32, -k, k)
        w_hh = jax.random.uniform(k2, (4 * hidden_size, hidden_size), jnp.float32, -k, k)
        b_ih = jax.random.uniform(k3, (4 * hidden_size,), jnp.float32, -k, k)
        b_hh = jax.random.uniform(k4, (4 * hidden_size,), jnp.float32, -k, k)
        params["lstm"].append((w_ih, w_hh, b_ih, b_hh))
    key, k5, k6 = jax.random.split(key, 3)
    params["fc_w"] = jax.random.uniform(k5, (output_size, hidden_size), jnp.float32, -k, k)
    params["fc_b"] = jax.random.uniform(k6, (output_size,), jnp.float32, -k, k)
    return params


# ------------------------------ pure-JAX reference ------------------------------

def _reference_forward(params, x_btd):
    x = jnp.transpose(x_btd, (1, 0, 2))             # (T, B, D)
    T, B, _ = x.shape
    h_seq = x
    for (w_ih, w_hh, b_ih, b_hh) in params["lstm"]:
        H = w_hh.shape[1]
        h = jnp.zeros((B, H), jnp.float32)
        c = jnp.zeros((B, H), jnp.float32)
        outs = []
        for t in range(T):
            g = h_seq[t] @ w_ih.T + h @ w_hh.T + b_ih + b_hh
            i = jax.nn.sigmoid(g[:, 0 * H:1 * H])
            f = jax.nn.sigmoid(g[:, 1 * H:2 * H])
            gg = jnp.tanh(g[:, 2 * H:3 * H])
            o = jax.nn.sigmoid(g[:, 3 * H:4 * H])
            c = f * c + i * gg
            h = o * jnp.tanh(c)
            outs.append(h)
        h_seq = jnp.stack(outs, axis=0)
    return h_seq[-1] @ params["fc_w"].T + params["fc_b"]


# ------------------------------------ main --------------------------------------

if __name__ == "__main__":
    B, T = 2, 8
    INPUT_SIZE, HIDDEN_SIZE, NUM_LAYERS, OUTPUT_SIZE = 16, 32, 2, 5

    key = jax.random.PRNGKey(0)
    key, pkey, xkey = jax.random.split(key, 3)
    params = init_params(pkey, INPUT_SIZE, HIDDEN_SIZE, NUM_LAYERS, OUTPUT_SIZE)
    packed = pack_params(params)          # one-time repack, outside the hot path
    x = jax.random.normal(xkey, (B, T, INPUT_SIZE), jnp.float32)

    y = multi_step_lstm_forward(packed, x)
    y = jax.block_until_ready(y)

    y_ref = _reference_forward(params, x)
    assert y.shape == (B, OUTPUT_SIZE)
    assert jnp.allclose(y, y_ref, rtol=1e-4, atol=1e-4), (
        f"mismatch: {jnp.max(jnp.abs(y - y_ref))}")

    print("KERNEL_OK")
</pallas_src>

<mosaic_0001>
module attributes {stable_mosaic.version = 11 : i64} {
  func.func @_fused_lstm_fc_kernel(%arg0: memref<2x8x16xf32, #tpu.memory_space<vmem>>, %arg1: memref<16x128xf32, #tpu.memory_space<vmem>>, %arg2: memref<32x128xf32, #tpu.memory_space<vmem>>, %arg3: memref<1x128xf32, #tpu.memory_space<vmem>>, %arg4: memref<32x128xf32, #tpu.memory_space<vmem>>, %arg5: memref<32x128xf32, #tpu.memory_space<vmem>>, %arg6: memref<1x128xf32, #tpu.memory_space<vmem>>, %arg7: memref<32x5xf32, #tpu.memory_space<vmem>>, %arg8: memref<1x5xf32, #tpu.memory_space<vmem>>, %arg9: memref<2x5xf32, #tpu.memory_space<vmem>>) attributes {dimension_semantics = [], scalar_prefetch = 0 : i64, scratch_operands = 0 : i64, tpu.core_type = #tpu.core_type<tc>} {
    %c0 = arith.constant 0 : index
    %c0_0 = arith.constant 0 : index
    %0 = vector.load %arg1[%c0, %c0_0] : memref<16x128xf32, #tpu.memory_space<vmem>>, vector<16x128xf32>
    %c0_1 = arith.constant 0 : index
    %c0_2 = arith.constant 0 : index
    %1 = vector.load %arg4[%c0_1, %c0_2] : memref<32x128xf32, #tpu.memory_space<vmem>>, vector<32x128xf32>
    %c0_3 = arith.constant 0 : index
    %c0_4 = arith.constant 0 : index
    %2 = vector.load %arg2[%c0_3, %c0_4] : memref<32x128xf32, #tpu.memory_space<vmem>>, vector<32x128xf32>
    %c0_5 = arith.constant 0 : index
    %c0_6 = arith.constant 0 : index
    %3 = vector.load %arg5[%c0_5, %c0_6] : memref<32x128xf32, #tpu.memory_space<vmem>>, vector<32x128xf32>
    %c0_7 = arith.constant 0 : index
    %c0_8 = arith.constant 0 : index
    %4 = vector.load %arg3[%c0_7, %c0_8] : memref<1x128xf32, #tpu.memory_space<vmem>>, vector<1x128xf32>
    %c0_9 = arith.constant 0 : index
    %c0_10 = arith.constant 0 : index
    %5 = vector.load %arg6[%c0_9, %c0_10] : memref<1x128xf32, #tpu.memory_space<vmem>>, vector<1x128xf32>
    %6 = vector.shape_cast %5 : vector<1x128xf32> to vector<1x128xf32>
    %7 = vector.broadcast %6 : vector<1x128xf32> to vector<2x128xf32>
    %c0_11 = arith.constant 0 : index
    %c0_12 = arith.constant 0 : index
    %c0_13 = arith.constant 0 : index
    %8 = vector.load %arg0[%c0_11, %c0_12, %c0_13] : memref<2x8x16xf32, #tpu.memory_space<vmem>>, vector<2x8x16xf32>
    %9 = vector.shape_cast %8 : vector<2x8x16xf32> to vector<16x16xf32>
    %cst = arith.constant dense<0.000000e+00> : vector<16x128xf32>
    %10 = tpu.matmul %9, %0, %cst {dimension_numbers = #tpu.dot_dimension_numbers<[1], [0], [0], [1], [0, 0, 1, 1], [], []>} : vector<16x16xf32>, vector<16x128xf32>, vector<16x128xf32> -> vector<16x128xf32>
    %11 = vector.broadcast %4 : vector<1x128xf32> to vector<16x128xf32>
    %12 = arith.addf %10, %11 : vector<16x128xf32>
    %13 = vector.shape_cast %12 : vector<16x128xf32> to vector<2x8x128xf32>
    %14 = tpu.transpose %13, [1, 0, 2] : vector<2x8x128xf32> -> vector<8x2x128xf32>
    %cst_14 = arith.constant 0.000000e+00 : f32
    %15 = vector.broadcast %cst_14 : f32 to vector<2x32xf32>
    %cst_15 = arith.constant 0.000000e+00 : f32
    %16 = vector.broadcast %cst_15 : f32 to vector<2x32xf32>
    %cst_16 = arith.constant 0.000000e+00 : f32
    %17 = vector.broadcast %cst_16 : f32 to vector<2x32xf32>
    %cst_17 = arith.constant 0.000000e+00 : f32
    %18 = vector.broadcast %cst_17 : f32 to vector<2x32xf32>
    %19 = vector.extract_strided_slice %14 {offsets = [0, 0, 0], sizes = [1, 2, 128], strides = [1, 1, 1]} : vector<8x2x128xf32> to vector<1x2x128xf32>
    %20 = vector.shape_cast %19 : vector<1x2x128xf32> to vector<2x128xf32>
    %cst_18 = arith.constant dense<0.000000e+00> : vector<2x128xf32>
    %21 = tpu.matmul %15, %2, %cst_18 {dimension_numbers = #tpu.dot_dimension_numbers<[1], [0], [0], [1], [0, 0, 1, 1], [], []>} : vector<2x32xf32>, vector<32x128xf32>, vector<2x128xf32> -> vector<2x128xf32>
    %22 = arith.addf %20, %21 : vector<2x128xf32>
    %23 = arith.negf %22 : vector<2x128xf32>
    %24 = math.exp %23 : vector<2x128xf32>
    %cst_19 = arith.constant 1.000000e+00 : f32
    %25 = vector.broadcast %cst_19 : f32 to vector<2x128xf32>
    %26 = arith.addf %25, %24 : vector<2x128xf32>
    %27 = arith.divf %25, %26 : vector<2x128xf32>
    %28 = vector.extract_strided_slice %22 {offsets = [0, 64], sizes = [2, 32], strides = [1, 1]} : vector<2x128xf32> to vector<2x32xf32>
    %29 = math.tanh %28 : vector<2x32xf32>
    %30 = vector.extract_strided_slice %27 {offsets = [0, 0], sizes = [2, 32], strides = [1, 1]} : vector<2x128xf32> to vector<2x32xf32>
    %31 = vector.extract_strided_slice %27 {offsets = [0, 32], sizes = [2, 32], strides = [1, 1]} : vector<2x128xf32> to vector<2x32xf32>
    %32 = vector.extract_strided_slice %27 {offsets = [0, 96], sizes = [2, 32], strides = [1, 1]} : vector<2x128xf32> to vector<2x32xf32>
    %33 = arith.mulf %31, %17 : vector<2x32xf32>
    %34 = arith.mulf %30, %29 : vector<2x32xf32>
    %35 = arith.addf %33, %34 : vector<2x32xf32>
    %36 = math.tanh %35 : vector<2x32xf32>
    %37 = arith.mulf %32, %36 : vector<2x32xf32>
    %cst_20 = arith.constant dense<0.000000e+00> : vector<2x128xf32>
    %38 = tpu.matmul %37, %1, %cst_20 {dimension_numbers = #tpu.dot_dimension_numbers<[1], [0], [0], [1], [0, 0, 1, 1], [], []>} : vector<2x32xf32>, vector<32x128xf32>, vector<2x128xf32> -> vector<2x128xf32>
    %39 = arith.addf %38, %7 : vector<2x128xf32>
    %cst_21 = arith.constant dense<0.000000e+00> : vector<2x128xf32>
    %40 = tpu.matmul %16, %3, %cst_21 {dimension_numbers = #tpu.dot_dimension_numbers<[1], [0], [0], [1], [0, 0, 1, 1], [], []>} : vector<2x32xf32>, vector<32x128xf32>, vector<2x128xf32> -> vector<2x128xf32>
    %41 = arith.addf %39, %40 : vector<2x128xf32>
    %42 = arith.negf %41 : vector<2x128xf32>
    %43 = math.exp %42 : vector<2x128xf32>
    %cst_22 = arith.constant 1.000000e+00 : f32
    %44 = vector.broadcast %cst_22 : f32 to vector<2x128xf32>
    %45 = arith.addf %44, %43 : vector<2x128xf32>
    %46 = arith.divf %44, %45 : vector<2x128xf32>
    %47 = vector.extract_strided_slice %41 {offsets = [0, 64], sizes = [2, 32], strides = [1, 1]} : vector<2x128xf32> to vector<2x32xf32>
    %48 = math.tanh %47 : vector<2x32xf32>
    %49 = vector.extract_strided_slice %46 {offsets = [0, 0], sizes = [2, 32], strides = [1, 1]} : vector<2x128xf32> to vector<2x32xf32>
    %50 = vector.extract_strided_slice %46 {offsets = [0, 32], sizes = [2, 32], strides = [1, 1]} : vector<2x128xf32> to vector<2x32xf32>
    %51 = vector.extract_strided_slice %46 {offsets = [0, 96], sizes = [2, 32], strides = [1, 1]} : vector<2x128xf32> to vector<2x32xf32>
    %52 = arith.mulf %50, %18 : vector<2x32xf32>
    %53 = arith.mulf %49, %48 : vector<2x32xf32>
    %54 = arith.addf %52, %53 : vector<2x32xf32>
    %55 = math.tanh %54 : vector<2x32xf32>
    %56 = arith.mulf %51, %55 : vector<2x32xf32>
    %57 = vector.extract_strided_slice %14 {offsets = [1, 0, 0], sizes = [1, 2, 128], strides = [1, 1, 1]} : vector<8x2x128xf32> to vector<1x2x128xf32>
    %58 = vector.shape_cast %57 : vector<1x2x128xf32> to vector<2x128xf32>
    %cst_23 = arith.constant dense<0.000000e+00> : vector<2x128xf32>
    %59 = tpu.matmul %37, %2, %cst_23 {dimension_numbers = #tpu.dot_dimension_numbers<[1], [0], [0], [1], [0, 0, 1, 1], [], []>} : vector<2x32xf32>, vector<32x128xf32>, vector<2x128xf32> -> vector<2x128xf32>
    %60 = arith.addf %58, %59 : vector<2x128xf32>
    %61 = arith.negf %60 : vector<2x128xf32>
    %62 = math.exp %61 : vector<2x128xf32>
    %cst_24 = arith.constant 1.000000e+00 : f32
    %63 = vector.broadcast %cst_24 : f32 to vector<2x128xf32>
    %64 = arith.addf %63, %62 : vector<2x128xf32>
    %65 = arith.divf %63, %64 : vector<2x128xf32>
    %66 = vector.extract_strided_slice %60 {offsets = [0, 64], sizes = [2, 32], strides = [1, 1]} : vector<2x128xf32> to vector<2x32xf32>
    %67 = math.tanh %66 : vector<2x32xf32>
    %68 = vector.extract_strided_slice %65 {offsets = [0, 0], sizes = [2, 32], strides = [1, 1]} : vector<2x128xf32> to vector<2x32xf32>
    %69 = vector.extract_strided_slice %65 {offsets = [0, 32], sizes = [2, 32], strides = [1, 1]} : vector<2x128xf32> to vector<2x32xf32>
    %70 = vector.extract_strided_slice %65 {offsets = [0, 96], sizes = [2, 32], strides = [1, 1]} : vector<2x128xf32> to vector<2x32xf32>
    %71 = arith.mulf %69, %35 : vector<2x32xf32>
    %72 = arith.mulf %68, %67 : vector<2x32xf32>
    %73 = arith.addf %71, %72 : vector<2x32xf32>
    %74 = math.tanh %73 : vector<2x32xf32>
    %75 = arith.mulf %70, %74 : vector<2x32xf32>
    %cst_25 = arith.constant dense<0.000000e+00> : vector<2x128xf32>
    %76 = tpu.matmul %75, %1, %cst_25 {dimension_numbers = #tpu.dot_dimension_numbers<[1], [0], [0], [1], [0, 0, 1, 1], [], []>} : vector<2x32xf32>, vector<32x128xf32>, vector<2x128xf32> -> vector<2x128xf32>
    %77 = arith.addf %76, %7 : vector<2x128xf32>
    %cst_26 = arith.constant dense<0.000000e+00> : vector<2x128xf32>
    %78 = tpu.matmul %56, %3, %cst_26 {dimension_numbers = #tpu.dot_dimension_numbers<[1], [0], [0], [1], [0, 0, 1, 1], [], []>} : vector<2x32xf32>, vector<32x128xf32>, vector<2x128xf32> -> vector<2x128xf32>
    %79 = arith.addf %77, %78 : vector<2x128xf32>
    %80 = arith.negf %79 : vector<2x128xf32>
    %81 = math.exp %80 : vector<2x128xf32>
    %cst_27 = arith.constant 1.000000e+00 : f32
    %82 = vector.broadcast %cst_27 : f32 to vector<2x128xf32>
    %83 = arith.addf %82, %81 : vector<2x128xf32>
    %84 = arith.divf %82, %83 : vector<2x128xf32>
    %85 = vector.extract_strided_slice %79 {offsets = [0, 64], sizes = [2, 32], strides = [1, 1]} : vector<2x128xf32> to vector<2x32xf32>
    %86 = math.tanh %85 : vector<2x32xf32>
    %87 = vector.extract_strided_slice %84 {offsets = [0, 0], sizes = [2, 32], strides = [1, 1]} : vector<2x128xf32> to vector<2x32xf32>
    %88 = vector.extract_strided_slice %84 {offsets = [0, 32], sizes = [2, 32], strides = [1, 1]} : vector<2x128xf32> to vector<2x32xf32>
    %89 = vector.extract_strided_slice %84 {offsets = [0, 96], sizes = [2, 32], strides = [1, 1]} : vector<2x128xf32> to vector<2x32xf32>
    %90 = arith.mulf %88, %54 : vector<2x32xf32>
    %91 = arith.mulf %87, %86 : vector<2x32xf32>
    %92 = arith.addf %90, %91 : vector<2x32xf32>
    %93 = math.tanh %92 : vector<2x32xf32>
    %94 = arith.mulf %89, %93 : vector<2x32xf32>
    %95 = vector.extract_strided_slice %14 {offsets = [2, 0, 0], sizes = [1, 2, 128], strides = [1, 1, 1]} : vector<8x2x128xf32> to vector<1x2x128xf32>
    %96 = vector.shape_cast %95 : vector<1x2x128xf32> to vector<2x128xf32>
    %cst_28 = arith.constant dense<0.000000e+00> : vector<2x128xf32>
    %97 = tpu.matmul %75, %2, %cst_28 {dimension_numbers = #tpu.dot_dimension_numbers<[1], [0], [0], [1], [0, 0, 1, 1], [], []>} : vector<2x32xf32>, vector<32x128xf32>, vector<2x128xf32> -> vector<2x128xf32>
    %98 = arith.addf %96, %97 : vector<2x128xf32>
    %99 = arith.negf %98 : vector<2x128xf32>
    %100 = math.exp %99 : vector<2x128xf32>
    %cst_29 = arith.constant 1.000000e+00 : f32
    %101 = vector.broadcast %cst_29 : f32 to vector<2x128xf32>
    %102 = arith.addf %101, %100 : vector<2x128xf32>
    %103 = arith.divf %101, %102 : vector<2x128xf32>
    %104 = vector.extract_strided_slice %98 {offsets = [0, 64], sizes = [2, 32], strides = [1, 1]} : vector<2x128xf32> to vector<2x32xf32>
    %105 = math.tanh %104 : vector<2x32xf32>
    %106 = vector.extract_strided_slice %103 {offsets = [0, 0], sizes = [2, 32], strides = [1, 1]} : vector<2x128xf32> to vector<2x32xf32>
    %107 = vector.extract_strided_slice %103 {offsets = [0, 32], sizes = [2, 32], strides = [1, 1]} : vector<2x128xf32> to vector<2x32xf32>
    %108 = vector.extract_strided_slice %103 {offsets = [0, 96], sizes = [2, 32], strides = [1, 1]} : vector<2x128xf32> to vector<2x32xf32>
    %109 = arith.mulf %107, %73 : vector<2x32xf32>
    %110 = arith.mulf %106, %105 : vector<2x32xf32>
    %111 = arith.addf %109, %110 : vector<2x32xf32>
    %112 = math.tanh %111 : vector<2x32xf32>
    %113 = arith.mulf %108, %112 : vector<2x32xf32>
    %cst_30 = arith.constant dense<0.000000e+00> : vector<2x128xf32>
    %114 = tpu.matmul %113, %1, %cst_30 {dimension_numbers = #tpu.dot_dimension_numbers<[1], [0], [0], [1], [0, 0, 1, 1], [], []>} : vector<2x32xf32>, vector<32x128xf32>, vector<2x128xf32> -> vector<2x128xf32>
    %115 = arith.addf %114, %7 : vector<2x128xf32>
    %cst_31 = arith.constant dense<0.000000e+00> : vector<2x128xf32>
    %116 = tpu.matmul %94, %3, %cst_31 {dimension_numbers = #tpu.dot_dimension_numbers<[1], [0], [0], [1], [0, 0, 1, 1], [], []>} : vector<2x32xf32>, vector<32x128xf32>, vector<2x128xf32> -> vector<2x128xf32>
    %117 = arith.addf %115, %116 : vector<2x128xf32>
    %118 = arith.negf %117 : vector<2x128xf32>
    %119 = math.exp %118 : vector<2x128xf32>
    %cst_32 = arith.constant 1.000000e+00 : f32
    %120 = vector.broadcast %cst_32 : f32 to vector<2x128xf32>
    %121 = arith.addf %120, %119 : vector<2x128xf32>
    %122 = arith.divf %120, %121 : vector<2x128xf32>
    %123 = vector.extract_strided_slice %117 {offsets = [0, 64], sizes = [2, 32], strides = [1, 1]} : vector<2x128xf32> to vector<2x32xf32>
    %124 = math.tanh %123 : vector<2x32xf32>
    %125 = vector.extract_strided_slice %122 {offsets = [0, 0], sizes = [2, 32], strides = [1, 1]} : vector<2x128xf32> to vector<2x32xf32>
    %126 = vector.extract_strided_slice %122 {offsets = [0, 32], sizes = [2, 32], strides = [1, 1]} : vector<2x128xf32> to vector<2x32xf32>
    %127 = vector.extract_strided_slice %122 {offsets = [0, 96], sizes = [2, 32], strides = [1, 1]} : vector<2x128xf32> to vector<2x32xf32>
    %128 = arith.mulf %126, %92 : vector<2x32xf32>
    %129 = arith.mulf %125, %124 : vector<2x32xf32>
    %130 = arith.addf %128, %129 : vector<2x32xf32>
    %131 = math.tanh %130 : vector<2x32xf32>
    %132 = arith.mulf %127, %131 : vector<2x32xf32>
    %133 = vector.extract_strided_slice %14 {offsets = [3, 0, 0], sizes = [1, 2, 128], strides = [1, 1, 1]} : vector<8x2x128xf32> to vector<1x2x128xf32>
    %134 = vector.shape_cast %133 : vector<1x2x128xf32> to vector<2x128xf32>
    %cst_33 = arith.constant dense<0.000000e+00> : vector<2x128xf32>
    %135 = tpu.matmul %113, %2, %cst_33 {dimension_numbers = #tpu.dot_dimension_numbers<[1], [0], [0], [1], [0, 0, 1, 1], [], []>} : vector<2x32xf32>, vector<32x128xf32>, vector<2x128xf32> -> vector<2x128xf32>
    %136 = arith.addf %134, %135 : vector<2x128xf32>
    %137 = arith.negf %136 : vector<2x128xf32>
    %138 = math.exp %137 : vector<2x128xf32>
    %cst_34 = arith.constant 1.000000e+00 : f32
    %139 = vector.broadcast %cst_34 : f32 to vector<2x128xf32>
    %140 = arith.addf %139, %138 : vector<2x128xf32>
    %141 = arith.divf %139, %140 : vector<2x128xf32>
    %142 = vector.extract_strided_slice %136 {offsets = [0, 64], sizes = [2, 32], strides = [1, 1]} : vector<2x128xf32> to vector<2x32xf32>
    %143 = math.tanh %142 : vector<2x32xf32>
    %144 = vector.extract_strided_slice %141 {offsets = [0, 0], sizes = [2, 32], strides = [1, 1]} : vector<2x128xf32> to vector<2x32xf32>
    %145 = vector.extract_strided_slice %141 {offsets = [0, 32], sizes = [2, 32], strides = [1, 1]} : vector<2x128xf32> to vector<2x32xf32>
    %146 = vector.extract_strided_slice %141 {offsets = [0, 96], sizes = [2, 32], strides = [1, 1]} : vector<2x128xf32> to vector<2x32xf32>
    %147 = arith.mulf %145, %111 : vector<2x32xf32>
    %148 = arith.mulf %144, %143 : vector<2x32xf32>
    %149 = arith.addf %147, %148 : vector<2x32xf32>
    %150 = math.tanh %149 : vector<2x32xf32>
    %151 = arith.mulf %146, %150 : vector<2x32xf32>
    %cst_35 = arith.constant dense<0.000000e+00> : vector<2x128xf32>
    %152 = tpu.matmul %151, %1, %cst_35 {dimension_numbers = #tpu.dot_dimension_numbers<[1], [0], [0], [1], [0, 0, 1, 1], [], []>} : vector<2x32xf32>, vector<32x128xf32>, vector<2x128xf32> -> vector<2x128xf32>
    %153 = arith.addf %152, %7 : vector<2x128xf32>
    %cst_36 = arith.constant dense<0.000000e+00> : vector<2x128xf32>
    %154 = tpu.matmul %132, %3, %cst_36 {dimension_numbers = #tpu.dot_dimension_numbers<[1], [0], [0], [1], [0, 0, 1, 1], [], []>} : vector<2x32xf32>, vector<32x128xf32>, vector<2x128xf32> -> vector<2x128xf32>
    %155 = arith.addf %153, %154 : vector<2x128xf32>
    %156 = arith.negf %155 : vector<2x128xf32>
    %157 = math.exp %156 : vector<2x128xf32>
    %cst_37 = arith.constant 1.000000e+00 : f32
    %158 = vector.broadcast %cst_37 : f32 to vector<2x128xf32>
    %159 = arith.addf %158, %157 : vector<2x128xf32>
    %160 = arith.divf %158, %159 : vector<2x128xf32>
    %161 = vector.extract_strided_slice %155 {offsets = [0, 64], sizes = [2, 32], strides = [1, 1]} : vector<2x128xf32> to vector<2x32xf32>
    %162 = math.tanh %161 : vector<2x32xf32>
    %163 = vector.extract_strided_slice %160 {offsets = [0, 0], sizes = [2, 32], strides = [1, 1]} : vector<2x128xf32> to vector<2x32xf32>
    %164 = vector.extract_strided_slice %160 {offsets = [0, 32], sizes = [2, 32], strides = [1, 1]} : vector<2x128xf32> to vector<2x32xf32>
    %165 = vector.extract_strided_slice %160 {offsets = [0, 96], sizes = [2, 32], strides = [1, 1]} : vector<2x128xf32> to vector<2x32xf32>
    %166 = arith.mulf %164, %130 : vector<2x32xf32>
    %167 = arith.mulf %163, %162 : vector<2x32xf32>
    %168 = arith.addf %166, %167 : vector<2x32xf32>
    %169 = math.tanh %168 : vector<2x32xf32>
    %170 = arith.mulf %165, %169 : vector<2x32xf32>
    %171 = vector.extract_strided_slice %14 {offsets = [4, 0, 0], sizes = [1, 2, 128], strides = [1, 1, 1]} : vector<8x2x128xf32> to vector<1x2x128xf32>
    %172 = vector.shape_cast %171 : vector<1x2x128xf32> to vector<2x128xf32>
    %cst_38 = arith.constant dense<0.000000e+00> : vector<2x128xf32>
    %173 = tpu.matmul %151, %2, %cst_38 {dimension_numbers = #tpu.dot_dimension_numbers<[1], [0], [0], [1], [0, 0, 1, 1], [], []>} : vector<2x32xf32>, vector<32x128xf32>, vector<2x128xf32> -> vector<2x128xf32>
    %174 = arith.addf %172, %173 : vector<2x128xf32>
    %175 = arith.negf %174 : vector<2x128xf32>
    %176 = math.exp %175 : vector<2x128xf32>
    %cst_39 = arith.constant 1.000000e+00 : f32
    %177 = vector.broadcast %cst_39 : f32 to vector<2x128xf32>
    %178 = arith.addf %177, %176 : vector<2x128xf32>
    %179 = arith.divf %177, %178 : vector<2x128xf32>
    %180 = vector.extract_strided_slice %174 {offsets = [0, 64], sizes = [2, 32], strides = [1, 1]} : vector<2x128xf32> to vector<2x32xf32>
    %181 = math.tanh %180 : vector<2x32xf32>
    %182 = vector.extract_strided_slice %179 {offsets = [0, 0], sizes = [2, 32], strides = [1, 1]} : vector<2x128xf32> to vector<2x32xf32>
    %183 = vector.extract_strided_slice %179 {offsets = [0, 32], sizes = [2, 32], strides = [1, 1]} : vector<2x128xf32> to vector<2x32xf32>
    %184 = vector.extract_strided_slice %179 {offsets = [0, 96], sizes = [2, 32], strides = [1, 1]} : vector<2x128xf32> to vector<2x32xf32>
    %185 = arith.mulf %183, %149 : vector<2x32xf32>
    %186 = arith.mulf %182, %181 : vector<2x32xf32>
    %187 = arith.addf %185, %186 : vector<2x32xf32>
    %188 = math.tanh %187 : vector<2x32xf32>
    %189 = arith.mulf %184, %188 : vector<2x32xf32>
    %cst_40 = arith.constant dense<0.000000e+00> : vector<2x128xf32>
    %190 = tpu.matmul %189, %1, %cst_40 {dimension_numbers = #tpu.dot_dimension_numbers<[1], [0], [0], [1], [0, 0, 1, 1], [], []>} : vector<2x32xf32>, vector<32x128xf32>, vector<2x128xf32> -> vector<2x128xf32>
    %191 = arith.addf %190, %7 : vector<2x128xf32>
    %cst_41 = arith.constant dense<0.000000e+00> : vector<2x128xf32>
    %192 = tpu.matmul %170, %3, %cst_41 {dimension_numbers = #tpu.dot_dimension_numbers<[1], [0], [0], [1], [0, 0, 1, 1], [], []>} : vector<2x32xf32>, vector<32x128xf32>, vector<2x128xf32> -> vector<2x128xf32>
    %193 = arith.addf %191, %192 : vector<2x128xf32>
    %194 = arith.negf %193 : vector<2x128xf32>
    %195 = math.exp %194 : vector<2x128xf32>
    %cst_42 = arith.constant 1.000000e+00 : f32
    %196 = vector.broadcast %cst_42 : f32 to vector<2x128xf32>
    %197 = arith.addf %196, %195 : vector<2x128xf32>
    %198 = arith.divf %196, %197 : vector<2x128xf32>
    %199 = vector.extract_strided_slice %193 {offsets = [0, 64], sizes = [2, 32], strides = [1, 1]} : vector<2x128xf32> to vector<2x32xf32>
    %200 = math.tanh %199 : vector<2x32xf32>
    %201 = vector.extract_strided_slice %198 {offsets = [0, 0], sizes = [2, 32], strides = [1, 1]} : vector<2x128xf32> to vector<2x32xf32>
    %202 = vector.extract_strided_slice %198 {offsets = [0, 32], sizes = [2, 32], strides = [1, 1]} : vector<2x128xf32> to vector<2x32xf32>
    %203 = vector.extract_strided_slice %198 {offsets = [0, 96], sizes = [2, 32], strides = [1, 1]} : vector<2x128xf32> to vector<2x32xf32>
    %204 = arith.mulf %202, %168 : vector<2x32xf32>
    %205 = arith.mulf %201, %200 : vector<2x32xf32>
    %206 = arith.addf %204, %205 : vector<2x32xf32>
    %207 = math.tanh %206 : vector<2x32xf32>
    %208 = arith.mulf %203, %207 : vector<2x32xf32>
    %209 = vector.extract_strided_slice %14 {offsets = [5, 0, 0], sizes = [1, 2, 128], strides = [1, 1, 1]} : vector<8x2x128xf32> to vector<1x2x128xf32>
    %210 = vector.shape_cast %209 : vector<1x2x128xf32> to vector<2x128xf32>
    %cst_43 = arith.constant dense<0.000000e+00> : vector<2x128xf32>
    %211 = tpu.matmul %189, %2, %cst_43 {dimension_numbers = #tpu.dot_dimension_numbers<[1], [0], [0], [1], [0, 0, 1, 1], [], []>} : vector<2x32xf32>, vector<32x128xf32>, vector<2x128xf32> -> vector<2x128xf32>
    %212 = arith.addf %210, %211 : vector<2x128xf32>
    %213 = arith.negf %212 : vector<2x128xf32>
    %214 = math.exp %213 : vector<2x128xf32>
    %cst_44 = arith.constant 1.000000e+00 : f32
    %215 = vector.broadcast %cst_44 : f32 to vector<2x128xf32>
    %216 = arith.addf %215, %214 : vector<2x128xf32>
    %217 = arith.divf %215, %216 : vector<2x128xf32>
    %218 = vector.extract_strided_slice %212 {offsets = [0, 64], sizes = [2, 32], strides = [1, 1]} : vector<2x128xf32> to vector<2x32xf32>
    %219 = math.tanh %218 : vector<2x32xf32>
    %220 = vector.extract_strided_slice %217 {offsets = [0, 0], sizes = [2, 32], strides = [1, 1]} : vector<2x128xf32> to vector<2x32xf32>
    %221 = vector.extract_strided_slice %217 {offsets = [0, 32], sizes = [2, 32], strides = [1, 1]} : vector<2x128xf32> to vector<2x32xf32>
    %222 = vector.extract_strided_slice %217 {offsets = [0, 96], sizes = [2, 32], strides = [1, 1]} : vector<2x128xf32> to vector<2x32xf32>
    %223 = arith.mulf %221, %187 : vector<2x32xf32>
    %224 = arith.mulf %220, %219 : vector<2x32xf32>
    %225 = arith.addf %223, %224 : vector<2x32xf32>
    %226 = math.tanh %225 : vector<2x32xf32>
    %227 = arith.mulf %222, %226 : vector<2x32xf32>
    %cst_45 = arith.constant dense<0.000000e+00> : vector<2x128xf32>
    %228 = tpu.matmul %227, %1, %cst_45 {dimension_numbers = #tpu.dot_dimension_numbers<[1], [0], [0], [1], [0, 0, 1, 1], [], []>} : vector<2x32xf32>, vector<32x128xf32>, vector<2x128xf32> -> vector<2x128xf32>
    %229 = arith.addf %228, %7 : vector<2x128xf32>
    %cst_46 = arith.constant dense<0.000000e+00> : vector<2x128xf32>
    %230 = tpu.matmul %208, %3, %cst_46 {dimension_numbers = #tpu.dot_dimension_numbers<[1], [0], [0], [1], [0, 0, 1, 1], [], []>} : vector<2x32xf32>, vector<32x128xf32>, vector<2x128xf32> -> vector<2x128xf32>
    %231 = arith.addf %229, %230 : vector<2x128xf32>
    %232 = arith.negf %231 : vector<2x128xf32>
    %233 = math.exp %232 : vector<2x128xf32>
    %cst_47 = arith.constant 1.000000e+00 : f32
    %234 = vector.broadcast %cst_47 : f32 to vector<2x128xf32>
    %235 = arith.addf %234, %233 : vector<2x128xf32>
    %236 = arith.divf %234, %235 : vector<2x128xf32>
    %237 = vector.extract_strided_slice %231 {offsets = [0, 64], sizes = [2, 32], strides = [1, 1]} : vector<2x128xf32> to vector<2x32xf32>
    %238 = math.tanh %237 : vector<2x32xf32>
    %239 = vector.extract_strided_slice %236 {offsets = [0, 0], sizes = [2, 32], strides = [1, 1]} : vector<2x128xf32> to vector<2x32xf32>
    %240 = vector.extract_strided_slice %236 {offsets = [0, 32], sizes = [2, 32], strides = [1, 1]} : vector<2x128xf32> to vector<2x32xf32>
    %241 = vector.extract_strided_slice %236 {offsets = [0, 96], sizes = [2, 32], strides = [1, 1]} : vector<2x128xf32> to vector<2x32xf32>
    %242 = arith.mulf %240, %206 : vector<2x32xf32>
    %243 = arith.mulf %239, %238 : vector<2x32xf32>
    %244 = arith.addf %242, %243 : vector<2x32xf32>
    %245 = math.tanh %244 : vector<2x32xf32>
    %246 = arith.mulf %241, %245 : vector<2x32xf32>
    %247 = vector.extract_strided_slice %14 {offsets = [6, 0, 0], sizes = [1, 2, 128], strides = [1, 1, 1]} : vector<8x2x128xf32> to vector<1x2x128xf32>
    %248 = vector.shape_cast %247 : vector<1x2x128xf32> to vector<2x128xf32>
    %cst_48 = arith.constant dense<0.000000e+00> : vector<2x128xf32>
    %249 = tpu.matmul %227, %2, %cst_48 {dimension_numbers = #tpu.dot_dimension_numbers<[1], [0], [0], [1], [0, 0, 1, 1], [], []>} : vector<2x32xf32>, vector<32x128xf32>, vector<2x128xf32> -> vector<2x128xf32>
    %250 = arith.addf %248, %249 : vector<2x128xf32>
    %251 = arith.negf %250 : vector<2x128xf32>
    %252 = math.exp %251 : vector<2x128xf32>
    %cst_49 = arith.constant 1.000000e+00 : f32
    %253 = vector.broadcast %cst_49 : f32 to vector<2x128xf32>
    %254 = arith.addf %253, %252 : vector<2x128xf32>
    %255 = arith.divf %253, %254 : vector<2x128xf32>
    %256 = vector.extract_strided_slice %250 {offsets = [0, 64], sizes = [2, 32], strides = [1, 1]} : vector<2x128xf32> to vector<2x32xf32>
    %257 = math.tanh %256 : vector<2x32xf32>
    %258 = vector.extract_strided_slice %255 {offsets = [0, 0], sizes = [2, 32], strides = [1, 1]} : vector<2x128xf32> to vector<2x32xf32>
    %259 = vector.extract_strided_slice %255 {offsets = [0, 32], sizes = [2, 32], strides = [1, 1]} : vector<2x128xf32> to vector<2x32xf32>
    %260 = vector.extract_strided_slice %255 {offsets = [0, 96], sizes = [2, 32], strides = [1, 1]} : vector<2x128xf32> to vector<2x32xf32>
    %261 = arith.mulf %259, %225 : vector<2x32xf32>
    %262 = arith.mulf %258, %257 : vector<2x32xf32>
    %263 = arith.addf %261, %262 : vector<2x32xf32>
    %264 = math.tanh %263 : vector<2x32xf32>
    %265 = arith.mulf %260, %264 : vector<2x32xf32>
    %cst_50 = arith.constant dense<0.000000e+00> : vector<2x128xf32>
    %266 = tpu.matmul %265, %1, %cst_50 {dimension_numbers = #tpu.dot_dimension_numbers<[1], [0], [0], [1], [0, 0, 1, 1], [], []>} : vector<2x32xf32>, vector<32x128xf32>, vector<2x128xf32> -> vector<2x128xf32>
    %267 = arith.addf %266, %7 : vector<2x128xf32>
    %cst_51 = arith.constant dense<0.000000e+00> : vector<2x128xf32>
    %268 = tpu.matmul %246, %3, %cst_51 {dimension_numbers = #tpu.dot_dimension_numbers<[1], [0], [0], [1], [0, 0, 1, 1], [], []>} : vector<2x32xf32>, vector<32x128xf32>, vector<2x128xf32> -> vector<2x128xf32>
    %269 = arith.addf %267, %268 : vector<2x128xf32>
    %270 = arith.negf %269 : vector<2x128xf32>
    %271 = math.exp %270 : vector<2x128xf32>
    %cst_52 = arith.constant 1.000000e+00 : f32
    %272 = vector.broadcast %cst_52 : f32 to vector<2x128xf32>
    %273 = arith.addf %272, %271 : vector<2x128xf32>
    %274 = arith.divf %272, %273 : vector<2x128xf32>
    %275 = vector.extract_strided_slice %269 {offsets = [0, 64], sizes = [2, 32], strides = [1, 1]} : vector<2x128xf32> to vector<2x32xf32>
    %276 = math.tanh %275 : vector<2x32xf32>
    %277 = vector.extract_strided_slice %274 {offsets = [0, 0], sizes = [2, 32], strides = [1, 1]} : vector<2x128xf32> to vector<2x32xf32>
    %278 = vector.extract_strided_slice %274 {offsets = [0, 32], sizes = [2, 32], strides = [1, 1]} : vector<2x128xf32> to vector<2x32xf32>
    %279 = vector.extract_strided_slice %274 {offsets = [0, 96], sizes = [2, 32], strides = [1, 1]} : vector<2x128xf32> to vector<2x32xf32>
    %280 = arith.mulf %278, %244 : vector<2x32xf32>
    %281 = arith.mulf %277, %276 : vector<2x32xf32>
    %282 = arith.addf %280, %281 : vector<2x32xf32>
    %283 = math.tanh %282 : vector<2x32xf32>
    %284 = arith.mulf %279, %283 : vector<2x32xf32>
    %285 = vector.extract_strided_slice %14 {offsets = [7, 0, 0], sizes = [1, 2, 128], strides = [1, 1, 1]} : vector<8x2x128xf32> to vector<1x2x128xf32>
    %286 = vector.shape_cast %285 : vector<1x2x128xf32> to vector<2x128xf32>
    %cst_53 = arith.constant dense<0.000000e+00> : vector<2x128xf32>
    %287 = tpu.matmul %265, %2, %cst_53 {dimension_numbers = #tpu.dot_dimension_numbers<[1], [0], [0], [1], [0, 0, 1, 1], [], []>} : vector<2x32xf32>, vector<32x128xf32>, vector<2x128xf32> -> vector<2x128xf32>
    %288 = arith.addf %286, %287 : vector<2x128xf32>
    %289 = arith.negf %288 : vector<2x128xf32>
    %290 = math.exp %289 : vector<2x128xf32>
    %cst_54 = arith.constant 1.000000e+00 : f32
    %291 = vector.broadcast %cst_54 : f32 to vector<2x128xf32>
    %292 = arith.addf %291, %290 : vector<2x128xf32>
    %293 = arith.divf %291, %292 : vector<2x128xf32>
    %294 = vector.extract_strided_slice %288 {offsets = [0, 64], sizes = [2, 32], strides = [1, 1]} : vector<2x128xf32> to vector<2x32xf32>
    %295 = math.tanh %294 : vector<2x32xf32>
    %296 = vector.extract_strided_slice %293 {offsets = [0, 0], sizes = [2, 32], strides = [1, 1]} : vector<2x128xf32> to vector<2x32xf32>
    %297 = vector.extract_strided_slice %293 {offsets = [0, 32], sizes = [2, 32], strides = [1, 1]} : vector<2x128xf32> to vector<2x32xf32>
    %298 = vector.extract_strided_slice %293 {offsets = [0, 96], sizes = [2, 32], strides = [1, 1]} : vector<2x128xf32> to vector<2x32xf32>
    %299 = arith.mulf %297, %263 : vector<2x32xf32>
    %300 = arith.mulf %296, %295 : vector<2x32xf32>
    %301 = arith.addf %299, %300 : vector<2x32xf32>
    %302 = math.tanh %301 : vector<2x32xf32>
    %303 = arith.mulf %298, %302 : vector<2x32xf32>
    %cst_55 = arith.constant dense<0.000000e+00> : vector<2x128xf32>
    %304 = tpu.matmul %303, %1, %cst_55 {dimension_numbers = #tpu.dot_dimension_numbers<[1], [0], [0], [1], [0, 0, 1, 1], [], []>} : vector<2x32xf32>, vector<32x128xf32>, vector<2x128xf32> -> vector<2x128xf32>
    %305 = arith.addf %304, %7 : vector<2x128xf32>
    %cst_56 = arith.constant dense<0.000000e+00> : vector<2x128xf32>
    %306 = tpu.matmul %284, %3, %cst_56 {dimension_numbers = #tpu.dot_dimension_numbers<[1], [0], [0], [1], [0, 0, 1, 1], [], []>} : vector<2x32xf32>, vector<32x128xf32>, vector<2x128xf32> -> vector<2x128xf32>
    %307 = arith.addf %305, %306 : vector<2x128xf32>
    %308 = arith.negf %307 : vector<2x128xf32>
    %309 = math.exp %308 : vector<2x128xf32>
    %cst_57 = arith.constant 1.000000e+00 : f32
    %310 = vector.broadcast %cst_57 : f32 to vector<2x128xf32>
    %311 = arith.addf %310, %309 : vector<2x128xf32>
    %312 = arith.divf %310, %311 : vector<2x128xf32>
    %313 = vector.extract_strided_slice %307 {offsets = [0, 64], sizes = [2, 32], strides = [1, 1]} : vector<2x128xf32> to vector<2x32xf32>
    %314 = math.tanh %313 : vector<2x32xf32>
    %315 = vector.extract_strided_slice %312 {offsets = [0, 0], sizes = [2, 32], strides = [1, 1]} : vector<2x128xf32> to vector<2x32xf32>
    %316 = vector.extract_strided_slice %312 {offsets = [0, 32], sizes = [2, 32], strides = [1, 1]} : vector<2x128xf32> to vector<2x32xf32>
    %317 = vector.extract_strided_slice %312 {offsets = [0, 96], sizes = [2, 32], strides = [1, 1]} : vector<2x128xf32> to vector<2x32xf32>
    %318 = arith.mulf %316, %282 : vector<2x32xf32>
    %319 = arith.mulf %315, %314 : vector<2x32xf32>
    %320 = arith.addf %318, %319 : vector<2x32xf32>
    %321 = math.tanh %320 : vector<2x32xf32>
    %322 = arith.mulf %317, %321 : vector<2x32xf32>
    %c0_58 = arith.constant 0 : index
    %c0_59 = arith.constant 0 : index
    %323 = vector.load %arg7[%c0_58, %c0_59] : memref<32x5xf32, #tpu.memory_space<vmem>>, vector<32x5xf32>
    %cst_60 = arith.constant dense<0.000000e+00> : vector<2x5xf32>
    %324 = tpu.matmul %322, %323, %cst_60 {dimension_numbers = #tpu.dot_dimension_numbers<[1], [0], [0], [1], [0, 0, 1, 1], [], []>} : vector<2x32xf32>, vector<32x5xf32>, vector<2x5xf32> -> vector<2x5xf32>
    %c0_61 = arith.constant 0 : index
    %c0_62 = arith.constant 0 : index
    %325 = vector.load %arg8[%c0_61, %c0_62] : memref<1x5xf32, #tpu.memory_space<vmem>>, vector<1x5xf32>
    %326 = vector.broadcast %325 : vector<1x5xf32> to vector<2x5xf32>
    %327 = arith.addf %324, %326 : vector<2x5xf32>
    %c0_63 = arith.constant 0 : index
    %c0_64 = arith.constant 0 : index
    %328 = vector.load %arg9[%c0_63, %c0_64] : memref<2x5xf32, #tpu.memory_space<vmem>>, vector<2x5xf32>
    tpu.vector_store %arg9[%c0_63, %c0_64], %327 {strides = array<i32>} : memref<2x5xf32, #tpu.memory_space<vmem>>, vector<2x5xf32>,
    return
  }
}

</mosaic_0001>

<bundles_post_ra>
// kernel: multi_step_lstm_forward.1
= control target key start
LH: loop header
LB: loop body
LE: loop exit
PB: predicated region body
PF: predicated region fallthrough
CT: control target
= control target key end

     0   :  { %14 = vsyncpa [#allocation3], 0  ;;  %s3815_s0 = inlined_call_operand.vmem [shape: f32[2,8,16], index: 0, kind: input, shape index: {}]   ;;  %s3816_s1 = inlined_call_operand.hbm [shape: f32[16,128], index: 1, kind: input, shape index: {}]   ;;  %s3817_s2 = inlined_call_operand.vmem [shape: f32[32,128], index: 2, kind: input, shape index: {}]   ;;  %s3818_s3 = inlined_call_operand.vmem [shape: f32[1,128], index: 3, kind: input, shape index: {}]   ;;  %s3819_s4 = inlined_call_operand.hbm [shape: f32[32,128], index: 4, kind: input, shape index: {}]   ;;  %s3820_s5 = inlined_call_operand.hbm [shape: f32[32,128], index: 5, kind: input, shape index: {}]   ;;  %s3821_s6 = inlined_call_operand.hbm [shape: f32[1,128], index: 6, kind: input, shape index: {}]   ;;  %s3822_s7 = inlined_call_operand.vmem [shape: f32[32,5], index: 7, kind: input, shape index: {}]   ;;  %s3823_s8 = inlined_call_operand.vmem [shape: f32[1,5], index: 8, kind: input, shape index: {}]   ;;  %s3824_s9 = inlined_call_operand.hbm [shape: f32[2,5], index: 9, kind: output, shape index: {}]  }
   0x1   :  { %15 = vsyncpa [#allocation6], 0 }
   0x2   :  { %16 = vsyncpa [#allocation9], 0 }
   0x3   :  { %17 = vsyncpa [#allocation4], 0  ;;  %s3245_s30 = smov [#allocation5]   ;;  %s3246_s11 = smov [#allocation2]  }
   0x4   :  { %s41_s10 = sshll.u32 %s3245_s30, 4  ;;  %s25_s12 = sshll.u32 %s3246_s11, 4  ;;  %s42_s10 = int_to_ptr.vmem [resolvable:$true] %s41_s10  ;;  %s26_s12 = int_to_ptr.vmem [resolvable:$true] %s25_s12 }
   0x5   :  { %s3145_s13 = scalar_lea.vmem %s42_s10, 512  ;;  %p3150_p1 = scmp.lt.s32.totalorder %s42_s10, %s42_s10 }
   0x6   :  { %p3146_p0 = scmp.ne.s32.totalorder %s42_s10, %s3145_s13  ;;  %p3151_p2 = scmp.lt.s32.totalorder %s3145_s13, %s3145_s13 }
   0x8   :  { %p3152_p3 = por %p3151_p2, %p3150_p1 }
   0xa   :  { %p3153_p4 = pnand %p3152_p3, %p3146_p0 }
   0xc   :  { %3156 = shalt.err (!%p3153_p4)
}
   0xd   :  { %s3247_s14 = smov 128   ;;  %s3248_s15 = smov 8  }
   0xe   :  { %47 = dma.hbm_to_vmem [thread:$0]  %s3819_s4, 512, %s42_s10, [#allocation6], %s3247_s14, %s3247_s14, %s3248_s15  }
   0xf   :  { %s3165_s18 = scalar_lea.vmem %s26_s12, 256  ;;  %p3170_p6 = scmp.lt.s32.totalorder %s26_s12, %s26_s12 }
  0x10   :  { %p3166_p5 = scmp.ne.s32.totalorder %s26_s12, %s3165_s18  ;;  %p3171_p7 = scmp.lt.s32.totalorder %s3165_s18, %s3165_s18 }
  0x12   :  { %p3172_p8 = por %p3171_p7, %p3170_p6 }
  0x14   :  { %p3173_p9 = pnand %p3172_p8, %p3166_p5 }
  0x16   :  { %3176 = shalt.err (!%p3173_p9)
}
  0x17   :  { %31 = dma.hbm_to_vmem [thread:$0]  %s3816_s1, 256, %s26_s12, [#allocation3], %s3247_s14, %s3247_s14, %s3248_s15  }
  0x18   :  { %s3249_s21 = smov [#allocation7]   ;;  %s3250_s23 = smov [#allocation8]  }
  0x19   :  { %s53_s22 = sshll.u32 %s3249_s21, 4  ;;  %s66_s24 = sshll.u32 %s3250_s23, 4  ;;  %s54_s22 = int_to_ptr.vmem [resolvable:$true] %s53_s22  ;;  %s67_s24 = int_to_ptr.vmem [resolvable:$true] %s66_s24 }
  0x1a   :  { %s3185_s25 = scalar_lea.vmem %s54_s22, 512  ;;  %p3190_p11 = scmp.lt.s32.totalorder %s54_s22, %s54_s22 }
  0x1b   :  { %p3186_p10 = scmp.ne.s32.totalorder %s54_s22, %s3185_s25  ;;  %p3191_p12 = scmp.lt.s32.totalorder %s3185_s25, %s3185_s25 }
  0x1d   :  { %p3192_p13 = por %p3191_p12, %p3190_p11 }
  0x1f   :  { %p3193_p0 = pnand %p3192_p13, %p3186_p10 }
  0x21   :  { %3196 = shalt.err (!%p3193_p0)
}
  0x22   :  { %59 = dma.hbm_to_vmem [thread:$0]  %s3820_s5, 512, %s54_s22, [#allocation6], %s3247_s14, %s3247_s14, %s3248_s15  }
  0x23   :  { %s3205_s27 = scalar_lea.vmem %s67_s24, 16  ;;  %s3209_s1 = scalar_lea.vmem %s67_s24, 32 }
  0x24   :  { %p3206_p1 = scmp.ne.s32.totalorder %s67_s24, %s3205_s27  ;;  %p3210_p2 = scmp.lt.s32.totalorder %s67_s24, %s67_s24 }
  0x25   :  { %p3211_p3 = scmp.lt.s32.totalorder %s3209_s1, %s3205_s27 }
  0x27   :  { %p3212_p4 = por %p3211_p3, %p3210_p2 }
  0x29   :  { %p3213_p5 = pnand %p3212_p4, %p3206_p1 }
  0x2b   :  { %3216 = shalt.err (!%p3213_p5)
}
  0x2c   :  { %69 = dma.hbm_to_vmem [thread:$0]  %s3821_s6, 16, %s67_s24, [#allocation9]  }
  0x2d   :  { %3237 = dma.done.wait [#allocation3], 256  }
  0x2e   :  { %3238 = vsyncadd [#allocation3], 4294967040 }
  0x2f   :  { %3239 = dma.done.wait [#allocation6], 1024  }
  0x30   :  { %3240 = vsyncadd [#allocation6], 4294966272 }
  0x31   :  { %3241 = dma.done.wait [#allocation9], 16  }
  0x32   :  { %3242 = vsyncadd [#allocation9], 4294967280  ;;  %v3251_v0 = vmov 0.0   ;;  %vm3252_vm0 = vmmov 0   ;;  %vm116_vm1 = vcmask 130048   ;;  %v87_v1 = vld [vmem:[#allocation2 + $0x8] sm:$0xff]  ;;  %v202_v11 = vlaneseq }
  0x33   :  { %2708 = vmatprep.subr.mxu1 %v3251_v0  ;;  %2716 = vmatprep.mubr.msk.f32.mxu1 %vm3252_vm0, %v3251_v0  ;;  %v86_v2 = vld [vmem:[#allocation2] sm:$0xff]  ;;  %v3330_v4 = vld [vmem:[%s3817_s2 + $0x18] sm:$0xff]  ;;  %v3335_v5 = vld [vmem:[%s3817_s2 + $0x10] sm:$0xff]  ;;  %v3253_v9 = vmov 1983009808   ;;  %s3256_s20 = smov 32  }
  0x34   :  { %v108_v3 = vld [vmem:[%s3815_s0] sm:$0xff]  ;;  %2701 = vmatprep.subr.mxu0 %v87_v1  ;;  %v109_v6 = vld [vmem:[%s3815_s0 + $0x8] sm:$0xff]  ;;  %2709 = vmatpush3.msra.mxu1 %v3330_v4  ;;  %v200_v10 = vunpack.c.l.s4 %v3253_v9  ;;  %v3254_v12 = vmov 1934713408   ;;  %v203_v15 = vshrl.u32 %v202_v11, 7  ;;  %v3395_v55 = vld [vmem:[#allocation5 + $0x8] sm:$0xff] }
  0x35   :  { %2705 = vmatprep.mubr.msk.f32.mxu0 %vm116_vm1, %v108_v3  ;;  %2702 = vmatpush3.msra.mxu0 %v87_v1  ;;  %v3345_v7 = vld [vmem:[%s3817_s2 + $0x8] sm:$0xff]  ;;  %v3353_v8 = vld [vmem:[%s3817_s2] sm:$0xff]  ;;  %v231_v13 = vunpack.c.l.s4 %v3254_v12  ;;  %v3398_v56 = vld [vmem:[#allocation7 + $0x8] sm:$0xff]  ;;  %vm264_vm2 = vcmask 261120   ;;  %s3257_s13 = smov [#allocation10]   ;;  %vm2509_vm3 = vcmask 33792  }
  0x36   :  { %2703 = vmatprep.subr.mxu0 %v86_v2  ;;  %2710 = vmatprep.subr.mxu1 %v3251_v0  ;;  %v201_v14 = vunpack.c.0.s8 %v200_v10  ;;  %v2529_v16 = vld [vmem:[%s3818_s3] ss:$0 sm:$0xff]  ;;  %s3255_s3 = smov 64   ;;  %v3384_v51 = vld [vmem:[#allocation5 + $0x18] sm:$0xff]  ;;  %v3403_v57 = vld [vmem:[#allocation5] sm:$0xff] }
  0x37   :  { %2704 = vmatpush3.msra.mxu0 %v86_v2  ;;  %2711 = vmatpush3.msra.mxu1 %v3335_v5  ;;  %v232_v18 = vunpack.c.0.s8 %v231_v13  ;;  %v3386_v52 = vld [vmem:[#allocation5 + $0x10] sm:$0xff]  ;;  %v3388_v53 = vld [vmem:[#allocation7 + $0x18] sm:$0xff]  ;;  %v3413_v59 = vld [vmem:[#allocation7] sm:$0xff] }
  0x38   :  { %2706 = vmatmul.mubr.msk.f32.vlgmr.msra.gmra.mxu0 %vm116_vm1, %v109_v6  ;;  %2712 = vmatprep.subr.mxu1 %v3251_v0  ;;  %v204_v20 = vsub.s32 %v201_v14, %v203_v15  ;;  %v3392_v54 = vld [vmem:[#allocation7 + $0x10] sm:$0xff]  ;;  %v3451_v2 = vld [vmem:[#allocation8] ss:$0 sm:$0xff] }
  0x39   :  { %2713 = vmatpush3.msra.mxu1 %v3345_v7  ;;  %2719 = vmatprep.subr.mxu0 %v3251_v0  ;;  %v235_v24 = vsub.s32 %v232_v18, %v203_v15 }
  0x3a   :  { %2714 = vmatprep.subr.mxu1 %v3251_v0  ;;  %2727 = vmatprep.mubr.msk.f32.mxu0 %vm3252_vm0, %v3251_v0 }
  0x3b   :  { %2715 = vmatpush3.msra.mxu1 %v3353_v8  ;;  %2720 = vmatpush3.msra.mxu0 %v3384_v51 }
  0x3c   :  { %2717 = vmatmul.mubr.f32.vlgmr.msra.gmra.mxu1 %v3251_v0  ;;  %2730 = vmatprep.subr.mxu1 %v3251_v0 }
  0x3d   :  { %2738 = vmatprep.mubr.msk.f32.mxu1 %vm3252_vm0, %v3251_v0  ;;  %2731 = vmatpush3.msra.mxu1 %v3388_v53 }
  0x3e   :  { %2721 = vmatprep.subr.mxu0 %v3251_v0  ;;  %2732 = vmatprep.subr.mxu1 %v3251_v0 }
  0x3f   :  { %2722 = vmatpush3.msra.mxu0 %v3386_v52  ;;  %2733 = vmatpush3.msra.mxu1 %v3392_v54 }
  0x40   :  { %2723 = vmatprep.subr.mxu0 %v3251_v0  ;;  %2734 = vmatprep.subr.mxu1 %v3251_v0 }
  0x41   :  { %2724 = vmatpush3.msra.mxu0 %v3395_v55  ;;  %2735 = vmatpush3.msra.mxu1 %v3398_v56 }
  0x42   :  { %2725 = vmatprep.subr.mxu0 %v3251_v0  ;;  %2736 = vmatprep.subr.mxu1 %v3251_v0 }
  0x43   :  { %2726 = vmatpush3.msra.mxu0 %v3403_v57  ;;  %2737 = vmatpush3.msra.mxu1 %v3413_v59 }
  0x44   :  { %2741 = vmatprep.subr.mxu0 %v3251_v0  ;;  %2739 = vmatmul.mubr.f32.vlgmr.msra.gmra.mxu1 %v3251_v0 }
  0x45   :  { %2752 = vmatprep.subr.mxu1 %v3251_v0  ;;  %2760 = vmatprep.mubr.msk.f32.mxu1 %vm3252_vm0, %v3251_v0 }
  0x46   :  { %2753 = vmatpush3.msra.mxu1 %v3384_v51 }
  0x47   :  { %2754 = vmatprep.subr.mxu1 %v3251_v0 }
  0x48   :  { %2755 = vmatpush3.msra.mxu1 %v3386_v52 }
  0x49   :  { %2756 = vmatprep.subr.mxu1 %v3251_v0 }
  0x4a   :  { %2757 = vmatpush3.msra.mxu1 %v3395_v55 }
  0x4b   :  { %2758 = vmatprep.subr.mxu1 %v3251_v0 }
  0x4c   :  { %2759 = vmatpush3.msra.mxu1 %v3403_v57 }
  0x4d   :  { %2774 = vmatprep.subr.mxu1 %v3251_v0 }
  0xf8   :  { %v2707_v17 = vpop.f32.mrf.mxu0 }
  0xf9   :  { %v195_v19 = vadd.f32 %v2707_v17, %v2529_v16 }
  0xfa   :  { %v189_v21 = vpop.f32.mrf.mxu0 }
  0xfb   :  { %v213_v22 = vcombine.high %v195_v19, %v3251_v0  ;;  %v190_v23 = vadd.f32 %v2529_v16, %v189_v21  ;;  %v220_v26 = vrot.slane %v195_v19, %v204_v20 }
  0xfc   :  { %v334_v25 = vpop.f32.mrf.mxu1 }
  0xfd   :  { %v227_v27 = vrot.slane %v213_v22, %v204_v20  ;;  %v198_v28 = vcombine.high %v190_v23, %v3251_v0  ;;  %v205_v29 = vrot.slane %v190_v23, %v204_v20 }
  0xfe   :  { %v2718_v30 = vpop.f32.mrf.mxu1 }
  0xff   :  { %v212_v31 = vrot.slane %v198_v28, %v204_v20  ;;  %v228_v32 = vcombine.low %v205_v29, %v220_v26  ;;  %v229_v33 = vcombine.high %v205_v29, %v220_v26 }
 0x101   :  { %v3370_v34 = vrot.slane %v228_v32, %v235_v24  ;;  %v3372_v35 = vrot.slane %v229_v33, %v235_v24  ;;  %v244_v36 = vcombine.low %v212_v31, %v227_v27  ;;  %v245_v37 = vcombine.high %v212_v31, %v227_v27 }
 0x103   :  { %v338_v38 = vadd.f32 %v334_v25, %v3370_v34  ;;  %v3375_v39 = vrot.slane %v244_v36, %v235_v24  ;;  %v3377_v40 = vrot.slane %v245_v37, %v235_v24  ;;  %v260_v11 = vcombine.high %v3370_v34, %v3251_v0 }
 0x104   :  { %v504_v63 = vpop.f32.mrf.mxu1 }
 0x105   :  { %2996 = vtanh.f32 %v338_v38  ;;  %v2532_v42 = vmul.f32 -1.442695, %v338_v38 }
 0x106   :  { %v2740_v1 = vpop.f32.mrf.mxu1 }
 0x107   :  { %2998 = vpow2.f32 %v2532_v42 }
 0x112   :  { %v2997_v41 = vpop.eup %2996 }
 0x113   :  { %348 = vrot.lane.b32.xlu0 %v2997_v41, %s3255_s3 }
 0x114   :  { %v2999_v43 = vpop.eup %2998 }
 0x115   :  { %v342_v44 = vadd.f32 1.0, %v2999_v43 }
 0x117   :  { %3000 = vrcp.f32 %v342_v44 }
 0x124   :  { %v3001_v45 = vpop.eup %3000 }
 0x125   :  { %v346_v48 = vmul.f32 0.0, %v3001_v45 }
 0x185   :  { %v349_v46 = vpop.permute.xlu0 %348 }
 0x186   :  { %v351_v47 = vmul.f32 %v3001_v45, %v349_v46 }
 0x188   :  { %353 = vrot.lane.b32.xlu0 %v351_v47, %s3256_s20 }
 0x1fa   :  { %v354_v49 = vpop.permute.xlu0 %353 }
 0x1fb   :  { %v3381_v50 = vadd.f32 %v354_v49, %v346_v48 }
 0x1fd   :  { %3002 = vtanh.f32 %v3381_v50 }
 0x20a   :  { %v3003_v58 = vpop.eup %3002 }
 0x20b   :  { %359 = vrot.lane.b32.xlu1 %v3003_v58, %s3255_s3 }
 0x27d   :  { %v360_v60 = vpop.permute.xlu1 %359 }
 0x27e   :  { %v362_v61 = vmul.f32 %v3001_v45, %v360_v60 }
 0x280   :  { %364 = vrot.lane.b32.xlu1 %v362_v61, %s3256_s20 }
 0x2f2   :  { %v365_v62 = vpop.permute.xlu1 %364 }
 0x2f3   :  { %2728 = vmatmul.mubr.msk.f32.vlgmr.msra.gmra.mxu0 %vm264_vm2, %v365_v62 }
 0x2f4   :  { %2742 = vmatpush3.msra.mxu0 %v3330_v4  ;;  %2749 = vmatprep.mubr.msk.f32.mxu0 %vm3252_vm0, %v3251_v0 }
 0x2f5   :  { %2743 = vmatprep.subr.mxu0 %v3251_v0 }
 0x2f6   :  { %2744 = vmatpush3.msra.mxu0 %v3335_v5 }
 0x2f7   :  { %2745 = vmatprep.subr.mxu0 %v3251_v0 }
 0x2f8   :  { %2746 = vmatpush3.msra.mxu0 %v3345_v7 }
 0x2f9   :  { %2747 = vmatprep.subr.mxu0 %v3251_v0 }
 0x2fa   :  { %2748 = vmatpush3.msra.mxu0 %v3353_v8 }
 0x2fb   :  { %2750 = vmatmul.mubr.msk.f32.vlgmr.msra.gmra.mxu0 %vm264_vm2, %v365_v62  ;;  %2763 = vmatprep.subr.mxu0 %v3251_v0 }
 0x2fc   :  { %2764 = vmatpush3.msra.mxu0 %v3388_v53  ;;  %2771 = vmatprep.mubr.msk.f32.mxu0 %vm3252_vm0, %v3251_v0 }
 0x2fd   :  { %2765 = vmatprep.subr.mxu0 %v3251_v0 }
 0x2fe   :  { %2766 = vmatpush3.msra.mxu0 %v3392_v54 }
 0x2ff   :  { %2767 = vmatprep.subr.mxu0 %v3251_v0 }
 0x300   :  { %2768 = vmatpush3.msra.mxu0 %v3398_v56 }
 0x301   :  { %2769 = vmatprep.subr.mxu0 %v3251_v0 }
 0x302   :  { %2770 = vmatpush3.msra.mxu0 %v3413_v59 }
 0x303   :  { %2785 = vmatprep.subr.mxu0 %v3251_v0 }
 0x3b3   :  { %v434_v3 = vpop.f32.mrf.mxu0 }
 0x3b4   :  { %v435_v6 = vadd.f32 %v3451_v2, %v434_v3 }
 0x3b5   :  { %v2729_v9 = vpop.f32.mrf.mxu0 }
 0x3b6   :  { %v508_v10 = vadd.f32 %v504_v63, %v435_v6 }
 0x3b8   :  { %3004 = vtanh.f32 %v508_v10  ;;  %v2534_v17 = vmul.f32 -1.442695, %v508_v10 }
 0x3bb   :  { %v599_v12 = vpop.f32.mrf.mxu0 }
 0x3bc   :  { %v603_v13 = vadd.f32 %v599_v12, %v260_v11 }
 0x3bd   :  { %v2751_v14 = vpop.f32.mrf.mxu0 }
 0x3be   :  { %3006 = vtanh.f32 %v603_v13  ;;  %v2536_v18 = vmul.f32 -1.442695, %v603_v13 }
 0x3bf   :  { %3008 = vpow2.f32 %v2534_v17 }
 0x3c0   :  { %3010 = vpow2.f32 %v2536_v18 }
 0x3c5   :  { %v3005_v15 = vpop.eup %3004 }
 0x3c6   :  { %518 = vrot.lane.b32.xlu1 %v3005_v15, %s3255_s3 }
 0x3cb   :  { %v3007_v16 = vpop.eup %3006 }
 0x3cc   :  { %613 = vrot.lane.b32.xlu0 %v3007_v16, %s3255_s3  ;;  %v3009_v19 = vpop.eup %3008 }
 0x3cd   :  { %v512_v20 = vadd.f32 1.0, %v3009_v19  ;;  %v3011_v21 = vpop.eup %3010 }
 0x3ce   :  { %v607_v22 = vadd.f32 1.0, %v3011_v21 }
 0x3cf   :  { %3012 = vrcp.f32 %v512_v20 }
 0x3d0   :  { %3014 = vrcp.f32 %v607_v22 }
 0x3dc   :  { %v3013_v23 = vpop.eup %3012 }
 0x3dd   :  { %v3015_v26 = vpop.eup %3014  ;;  %v516_v29 = vmul.f32 0.0, %v3013_v23 }
 0x3de   :  { %v611_v32 = vmul.f32 %v3015_v26, %v3381_v50 }
 0x438   :  { %v519_v24 = vpop.permute.xlu1 %518 }
 0x439   :  { %v521_v25 = vmul.f32 %v3013_v23, %v519_v24 }
 0x43b   :  { %523 = vrot.lane.b32.xlu1 %v521_v25, %s3256_s20 }
 0x43e   :  { %v614_v27 = vpop.permute.xlu0 %613 }
 0x43f   :  { %v616_v28 = vmul.f32 %v3015_v26, %v614_v27 }
 0x441   :  { %618 = vrot.lane.b32.xlu0 %v616_v28, %s3256_s20 }
 0x4ad   :  { %v524_v30 = vpop.permute.xlu1 %523 }
 0x4ae   :  { %v3460_v31 = vadd.f32 %v524_v30, %v516_v29 }
 0x4b0   :  { %3016 = vtanh.f32 %v3460_v31 }
 0x4b3   :  { %v619_v33 = vpop.permute.xlu0 %618 }
 0x4b4   :  { %v3464_v34 = vadd.f32 %v619_v33, %v611_v32 }
 0x4b6   :  { %3018 = vtanh.f32 %v3464_v34 }
 0x4bd   :  { %v3017_v36 = vpop.eup %3016 }
 0x4be   :  { %529 = vrot.lane.b32.xlu1 %v3017_v36, %s3255_s3 }
 0x4c3   :  { %v3019_v37 = vpop.eup %3018 }
 0x4c4   :  { %624 = vrot.lane.b32.xlu0 %v3019_v37, %s3255_s3 }
 0x530   :  { %v530_v38 = vpop.permute.xlu1 %529 }
 0x531   :  { %v532_v41 = vmul.f32 %v3013_v23, %v530_v38 }
 0x533   :  { %704 = vrot.lane.b32.xlu1 %v532_v41, %s3256_s20 }
 0x536   :  { %v625_v42 = vpop.permute.xlu0 %624 }
 0x537   :  { %v627_v43 = vmul.f32 %v3015_v26, %v625_v42  ;;  %v261_v42 = vcombine.high %v3372_v35, %v3251_v0 }
 0x539   :  { %629 = vrot.lane.b32.xlu0 %v627_v43, %s3256_s20 }
 0x5a5   :  { %v705_v44 = vpop.permute.xlu1 %704 }
 0x5a6   :  { %2772 = vmatmul.mubr.msk.f32.vlgmr.msra.gmra.mxu0 %vm264_vm2, %v705_v44 }
 0x5a7   :  { %2786 = vmatpush3.msra.mxu0 %v3384_v51  ;;  %2793 = vmatprep.mubr.msk.f32.mxu0 %vm3252_vm0, %v3251_v0 }
 0x5a8   :  { %2787 = vmatprep.subr.mxu0 %v3251_v0 }
 0x5a9   :  { %2788 = vmatpush3.msra.mxu0 %v3386_v52 }
 0x5aa   :  { %2789 = vmatprep.subr.mxu0 %v3251_v0 }
 0x5ab   :  { %v630_v45 = vpop.permute.xlu0 %629  ;;  %2790 = vmatpush3.msra.mxu0 %v3395_v55 }
 0x5ac   :  { %2761 = vmatmul.mubr.msk.f32.vlgmr.msra.gmra.mxu1 %vm264_vm2, %v630_v45  ;;  %2791 = vmatprep.subr.mxu0 %v3251_v0 }
 0x5ad   :  { %2775 = vmatpush3.msra.mxu1 %v3330_v4  ;;  %2782 = vmatprep.mubr.msk.f32.mxu1 %vm3252_vm0, %v3251_v0 }
 0x5ae   :  { %2776 = vmatprep.subr.mxu1 %v3251_v0  ;;  %2792 = vmatpush3.msra.mxu0 %v3403_v57 }
 0x5af   :  { %2777 = vmatpush3.msra.mxu1 %v3335_v5  ;;  %2807 = vmatprep.subr.mxu0 %v3251_v0 }
 0x5b0   :  { %2778 = vmatprep.subr.mxu1 %v3251_v0 }
 0x5b1   :  { %2779 = vmatpush3.msra.mxu1 %v3345_v7 }
 0x5b2   :  { %2780 = vmatprep.subr.mxu1 %v3251_v0 }
 0x5b3   :  { %2781 = vmatpush3.msra.mxu1 %v3353_v8 }
 0x5b4   :  { %2783 = vmatmul.mubr.msk.f32.vlgmr.msra.gmra.mxu1 %vm264_vm2, %v630_v45  ;;  %2796 = vmatprep.subr.mxu1 %v3251_v0 }
 0x5b5   :  { %2797 = vmatpush3.msra.mxu1 %v3388_v53  ;;  %2804 = vmatprep.mubr.msk.f32.mxu1 %vm3252_vm0, %v3251_v0 }
 0x5b6   :  { %2798 = vmatprep.subr.mxu1 %v3251_v0 }
 0x5b7   :  { %2799 = vmatpush3.msra.mxu1 %v3392_v54 }
 0x5b8   :  { %2800 = vmatprep.subr.mxu1 %v3251_v0 }
 0x5b9   :  { %2801 = vmatpush3.msra.mxu1 %v3398_v56 }
 0x5ba   :  { %2802 = vmatprep.subr.mxu1 %v3251_v0 }
 0x5bb   :  { %2803 = vmatpush3.msra.mxu1 %v3413_v59 }
 0x5bc   :  { %2818 = vmatprep.subr.mxu1 %v3251_v0 }
 0x666   :  { %v774_v46 = vpop.f32.mrf.mxu0 }
 0x668   :  { %v2773_v47 = vpop.f32.mrf.mxu0 }
 0x66c   :  { %v699_v48 = vpop.f32.mrf.mxu1 }
 0x66d   :  { %v700_v49 = vadd.f32 %v3451_v2, %v699_v48 }
 0x66e   :  { %v2762_v50 = vpop.f32.mrf.mxu1 }
 0x66f   :  { %v778_v58 = vadd.f32 %v774_v46, %v700_v49 }
 0x671   :  { %3020 = vtanh.f32 %v778_v58  ;;  %v2539_v3 = vmul.f32 -1.442695, %v778_v58 }
 0x674   :  { %v869_v60 = vpop.f32.mrf.mxu1 }
 0x675   :  { %v873_v61 = vadd.f32 %v869_v60, %v3372_v35 }
 0x676   :  { %v2784_v62 = vpop.f32.mrf.mxu1 }
 0x677   :  { %3022 = vtanh.f32 %v873_v61  ;;  %v2541_v6 = vmul.f32 -1.442695, %v873_v61 }
 0x678   :  { %3024 = vpow2.f32 %v2539_v3 }
 0x679   :  { %3026 = vpow2.f32 %v2541_v6 }
 0x67e   :  { %v3021_v63 = vpop.eup %3020 }
 0x67f   :  { %788 = vrot.lane.b32.xlu1 %v3021_v63, %s3255_s3 }
 0x684   :  { %v3023_v1 = vpop.eup %3022 }
 0x685   :  { %883 = vrot.lane.b32.xlu0 %v3023_v1, %s3255_s3  ;;  %v3025_v9 = vpop.eup %3024 }
 0x686   :  { %v782_v10 = vadd.f32 1.0, %v3025_v9  ;;  %v3027_v11 = vpop.eup %3026 }
 0x687   :  { %v877_v12 = vadd.f32 1.0, %v3027_v11 }
 0x688   :  { %3028 = vrcp.f32 %v782_v10 }
 0x689   :  { %3030 = vrcp.f32 %v877_v12 }
 0x695   :  { %v3029_v13 = vpop.eup %3028 }
 0x696   :  { %v3031_v16 = vpop.eup %3030  ;;  %v786_v19 = vmul.f32 %v3029_v13, %v3460_v31 }
 0x697   :  { %v881_v22 = vmul.f32 %v3031_v16, %v3464_v34 }
 0x6f1   :  { %v789_v14 = vpop.permute.xlu1 %788 }
 0x6f2   :  { %v791_v15 = vmul.f32 %v3029_v13, %v789_v14 }
 0x6f4   :  { %793 = vrot.lane.b32.xlu1 %v791_v15, %s3256_s20 }
 0x6f7   :  { %v884_v17 = vpop.permute.xlu0 %883 }
 0x6f8   :  { %v886_v18 = vmul.f32 %v3031_v16, %v884_v17 }
 0x6fa   :  { %888 = vrot.lane.b32.xlu0 %v886_v18, %s3256_s20 }
 0x766   :  { %v794_v20 = vpop.permute.xlu1 %793 }
 0x767   :  { %v3511_v21 = vadd.f32 %v794_v20, %v786_v19 }
 0x769   :  { %3032 = vtanh.f32 %v3511_v21 }
 0x76c   :  { %v889_v23 = vpop.permute.xlu0 %888 }
 0x76d   :  { %v3515_v24 = vadd.f32 %v889_v23, %v881_v22 }
 0x76f   :  { %3034 = vtanh.f32 %v3515_v24 }
 0x776   :  { %v3033_v25 = vpop.eup %3032 }
 0x777   :  { %799 = vrot.lane.b32.xlu1 %v3033_v25, %s3255_s3 }
 0x77c   :  { %v3035_v26 = vpop.eup %3034 }
 0x77d   :  { %894 = vrot.lane.b32.xlu0 %v3035_v26, %s3255_s3 }
 0x7e9   :  { %v800_v27 = vpop.permute.xlu1 %799 }
 0x7ea   :  { %v802_v28 = vmul.f32 %v3029_v13, %v800_v27 }
 0x7ec   :  { %974 = vrot.lane.b32.xlu1 %v802_v28, %s3256_s20 }
 0x7ef   :  { %v895_v29 = vpop.permute.xlu0 %894 }
 0x7f0   :  { %v897_v30 = vmul.f32 %v3031_v16, %v895_v29 }
 0x7f2   :  { %899 = vrot.lane.b32.xlu0 %v897_v30, %s3256_s20 }
 0x85e   :  { %v975_v31 = vpop.permute.xlu1 %974 }
 0x85f   :  { %2805 = vmatmul.mubr.msk.f32.vlgmr.msra.gmra.mxu1 %vm264_vm2, %v975_v31 }
 0x860   :  { %2819 = vmatpush3.msra.mxu1 %v3384_v51  ;;  %2826 = vmatprep.mubr.msk.f32.mxu1 %vm3252_vm0, %v3251_v0 }
 0x861   :  { %2820 = vmatprep.subr.mxu1 %v3251_v0 }
 0x862   :  { %2821 = vmatpush3.msra.mxu1 %v3386_v52 }
 0x863   :  { %2822 = vmatprep.subr.mxu1 %v3251_v0 }
 0x864   :  { %v900_v32 = vpop.permute.xlu0 %899  ;;  %2823 = vmatpush3.msra.mxu1 %v3395_v55 }
 0x865   :  { %2794 = vmatmul.mubr.msk.f32.vlgmr.msra.gmra.mxu0 %vm264_vm2, %v900_v32  ;;  %2824 = vmatprep.subr.mxu1 %v3251_v0 }
 0x866   :  { %2808 = vmatpush3.msra.mxu0 %v3330_v4  ;;  %2815 = vmatprep.mubr.msk.f32.mxu0 %vm3252_vm0, %v3251_v0 }
 0x867   :  { %2809 = vmatprep.subr.mxu0 %v3251_v0  ;;  %2825 = vmatpush3.msra.mxu1 %v3403_v57 }
 0x868   :  { %2810 = vmatpush3.msra.mxu0 %v3335_v5  ;;  %2840 = vmatprep.subr.mxu1 %v3251_v0 }
 0x869   :  { %2811 = vmatprep.subr.mxu0 %v3251_v0 }
 0x86a   :  { %2812 = vmatpush3.msra.mxu0 %v3345_v7 }
 0x86b   :  { %2813 = vmatprep.subr.mxu0 %v3251_v0 }
 0x86c   :  { %2814 = vmatpush3.msra.mxu0 %v3353_v8 }
 0x86d   :  { %2816 = vmatmul.mubr.msk.f32.vlgmr.msra.gmra.mxu0 %vm264_vm2, %v900_v32  ;;  %2829 = vmatprep.subr.mxu0 %v3251_v0 }
 0x86e   :  { %2830 = vmatpush3.msra.mxu0 %v3388_v53  ;;  %2837 = vmatprep.mubr.msk.f32.mxu0 %vm3252_vm0, %v3251_v0 }
 0x86f   :  { %2831 = vmatprep.subr.mxu0 %v3251_v0 }
 0x870   :  { %2832 = vmatpush3.msra.mxu0 %v3392_v54 }
 0x871   :  { %2833 = vmatprep.subr.mxu0 %v3251_v0 }
 0x872   :  { %2834 = vmatpush3.msra.mxu0 %v3398_v56 }
 0x873   :  { %2835 = vmatprep.subr.mxu0 %v3251_v0 }
 0x874   :  { %2836 = vmatpush3.msra.mxu0 %v3413_v59 }
 0x875   :  { %2851 = vmatprep.subr.mxu0 %v3251_v0 }
 0x91f   :  { %v1044_v33 = vpop.f32.mrf.mxu1 }
 0x921   :  { %v2806_v34 = vpop.f32.mrf.mxu1 }
 0x925   :  { %v969_v36 = vpop.f32.mrf.mxu0 }
 0x926   :  { %v970_v37 = vadd.f32 %v3451_v2, %v969_v36 }
 0x927   :  { %v2795_v38 = vpop.f32.mrf.mxu0 }
 0x928   :  { %v1048_v41 = vadd.f32 %v1044_v33, %v970_v37 }
 0x92a   :  { %3036 = vtanh.f32 %v1048_v41  ;;  %v2544_v48 = vmul.f32 -1.442695, %v1048_v41 }
 0x92d   :  { %v1139_v43 = vpop.f32.mrf.mxu0 }
 0x92e   :  { %v1143_v44 = vadd.f32 %v1139_v43, %v261_v42 }
 0x92f   :  { %v2817_v45 = vpop.f32.mrf.mxu0 }
 0x930   :  { %3038 = vtanh.f32 %v1143_v44  ;;  %v2546_v49 = vmul.f32 -1.442695, %v1143_v44 }
 0x931   :  { %3040 = vpow2.f32 %v2544_v48 }
 0x932   :  { %3042 = vpow2.f32 %v2546_v49 }
 0x937   :  { %v3037_v46 = vpop.eup %3036 }
 0x938   :  { %1058 = vrot.lane.b32.xlu1 %v3037_v46, %s3255_s3 }
 0x93d   :  { %v3039_v47 = vpop.eup %3038 }
 0x93e   :  { %1153 = vrot.lane.b32.xlu0 %v3039_v47, %s3255_s3  ;;  %v3041_v50 = vpop.eup %3040 }
 0x93f   :  { %v1052_v58 = vadd.f32 1.0, %v3041_v50  ;;  %v3043_v60 = vpop.eup %3042 }
 0x940   :  { %v1147_v61 = vadd.f32 1.0, %v3043_v60 }
 0x941   :  { %3044 = vrcp.f32 %v1052_v58 }
 0x942   :  { %3046 = vrcp.f32 %v1147_v61 }
 0x94e   :  { %v3045_v35 = vpop.eup %3044 }
 0x94f   :  { %v3047_v1 = vpop.eup %3046  ;;  %v1056_v9 = vmul.f32 %v3045_v35, %v3511_v21 }
 0x950   :  { %v1151_v12 = vmul.f32 %v3047_v1, %v3515_v24 }
 0x9aa   :  { %v1059_v62 = vpop.permute.xlu1 %1058 }
 0x9ab   :  { %v1061_v63 = vmul.f32 %v3045_v35, %v1059_v62 }
 0x9ad   :  { %1063 = vrot.lane.b32.xlu1 %v1061_v63, %s3256_s20 }
 0x9b0   :  { %v1154_v3 = vpop.permute.xlu0 %1153 }
 0x9b1   :  { %v1156_v6 = vmul.f32 %v3047_v1, %v1154_v3 }
 0x9b3   :  { %1158 = vrot.lane.b32.xlu0 %v1156_v6, %s3256_s20 }
 0xa1f   :  { %v1064_v10 = vpop.permute.xlu1 %1063 }
 0xa20   :  { %v3563_v11 = vadd.f32 %v1064_v10, %v1056_v9 }
 0xa22   :  { %3048 = vtanh.f32 %v3563_v11 }
 0xa25   :  { %v1159_v13 = vpop.permute.xlu0 %1158 }
 0xa26   :  { %v3567_v14 = vadd.f32 %v1159_v13, %v1151_v12 }
 0xa28   :  { %3050 = vtanh.f32 %v3567_v14 }
 0xa2f   :  { %v3049_v15 = vpop.eup %3048 }
 0xa30   :  { %1069 = vrot.lane.b32.xlu1 %v3049_v15, %s3255_s3 }
 0xa35   :  { %v3051_v16 = vpop.eup %3050 }
 0xa36   :  { %1164 = vrot.lane.b32.xlu0 %v3051_v16, %s3255_s3 }
 0xaa2   :  { %v1070_v17 = vpop.permute.xlu1 %1069 }
 0xaa3   :  { %v1072_v18 = vmul.f32 %v3045_v35, %v1070_v17 }
 0xaa5   :  { %1244 = vrot.lane.b32.xlu1 %v1072_v18, %s3256_s20 }
 0xaa8   :  { %v1165_v19 = vpop.permute.xlu0 %1164 }
 0xaa9   :  { %v1167_v20 = vmul.f32 %v3047_v1, %v1165_v19 }
 0xaab   :  { %1169 = vrot.lane.b32.xlu0 %v1167_v20, %s3256_s20 }
 0xb17   :  { %v1245_v21 = vpop.permute.xlu1 %1244 }
 0xb18   :  { %2838 = vmatmul.mubr.msk.f32.vlgmr.msra.gmra.mxu0 %vm264_vm2, %v1245_v21 }
 0xb19   :  { %2852 = vmatpush3.msra.mxu0 %v3384_v51  ;;  %2859 = vmatprep.mubr.msk.f32.mxu0 %vm3252_vm0, %v3251_v0 }
 0xb1a   :  { %2853 = vmatprep.subr.mxu0 %v3251_v0 }
 0xb1b   :  { %2854 = vmatpush3.msra.mxu0 %v3386_v52 }
 0xb1c   :  { %2855 = vmatprep.subr.mxu0 %v3251_v0 }
 0xb1d   :  { %v1170_v22 = vpop.permute.xlu0 %1169  ;;  %2856 = vmatpush3.msra.mxu0 %v3395_v55 }
 0xb1e   :  { %2827 = vmatmul.mubr.msk.f32.vlgmr.msra.gmra.mxu1 %vm264_vm2, %v1170_v22  ;;  %2857 = vmatprep.subr.mxu0 %v3251_v0 }
 0xb1f   :  { %2841 = vmatpush3.msra.mxu1 %v3330_v4  ;;  %2848 = vmatprep.mubr.msk.f32.mxu1 %vm3252_vm0, %v3251_v0 }
 0xb20   :  { %2842 = vmatprep.subr.mxu1 %v3251_v0  ;;  %2858 = vmatpush3.msra.mxu0 %v3403_v57 }
 0xb21   :  { %2843 = vmatpush3.msra.mxu1 %v3335_v5  ;;  %2873 = vmatprep.subr.mxu0 %v3251_v0 }
 0xb22   :  { %2844 = vmatprep.subr.mxu1 %v3251_v0 }
 0xb23   :  { %2845 = vmatpush3.msra.mxu1 %v3345_v7 }
 0xb24   :  { %2846 = vmatprep.subr.mxu1 %v3251_v0 }
 0xb25   :  { %2847 = vmatpush3.msra.mxu1 %v3353_v8 }
 0xb26   :  { %2849 = vmatmul.mubr.msk.f32.vlgmr.msra.gmra.mxu1 %vm264_vm2, %v1170_v22  ;;  %2862 = vmatprep.subr.mxu1 %v3251_v0 }
 0xb27   :  { %2863 = vmatpush3.msra.mxu1 %v3388_v53  ;;  %2870 = vmatprep.mubr.msk.f32.mxu1 %vm3252_vm0, %v3251_v0 }
 0xb28   :  { %2864 = vmatprep.subr.mxu1 %v3251_v0 }
 0xb29   :  { %2865 = vmatpush3.msra.mxu1 %v3392_v54 }
 0xb2a   :  { %2866 = vmatprep.subr.mxu1 %v3251_v0 }
 0xb2b   :  { %2867 = vmatpush3.msra.mxu1 %v3398_v56 }
 0xb2c   :  { %2868 = vmatprep.subr.mxu1 %v3251_v0 }
 0xb2d   :  { %2869 = vmatpush3.msra.mxu1 %v3413_v59 }
 0xb2e   :  { %2884 = vmatprep.subr.mxu1 %v3251_v0 }
 0xbd8   :  { %v1314_v23 = vpop.f32.mrf.mxu0 }
 0xbda   :  { %v2839_v24 = vpop.f32.mrf.mxu0 }
 0xbde   :  { %v1239_v25 = vpop.f32.mrf.mxu1 }
 0xbdf   :  { %v1240_v26 = vadd.f32 %v3451_v2, %v1239_v25 }
 0xbe0   :  { %v2828_v27 = vpop.f32.mrf.mxu1 }
 0xbe1   :  { %v1318_v28 = vadd.f32 %v1314_v23, %v1240_v26 }
 0xbe3   :  { %3052 = vtanh.f32 %v1318_v28  ;;  %v2549_v34 = vmul.f32 -1.442695, %v1318_v28 }
 0xbe6   :  { %v1409_v29 = vpop.f32.mrf.mxu1 }
 0xbe7   :  { %v1413_v30 = vadd.f32 %v1409_v29, %v3375_v39 }
 0xbe8   :  { %v2850_v31 = vpop.f32.mrf.mxu1 }
 0xbe9   :  { %3054 = vtanh.f32 %v1413_v30  ;;  %v2551_v36 = vmul.f32 -1.442695, %v1413_v30 }
 0xbea   :  { %3056 = vpow2.f32 %v2549_v34 }
 0xbeb   :  { %3058 = vpow2.f32 %v2551_v36 }
 0xbf0   :  { %v3053_v32 = vpop.eup %3052 }
 0xbf1   :  { %1328 = vrot.lane.b32.xlu1 %v3053_v32, %s3255_s3 }
 0xbf6   :  { %v3055_v33 = vpop.eup %3054 }
 0xbf7   :  { %1423 = vrot.lane.b32.xlu0 %v3055_v33, %s3255_s3  ;;  %v3057_v37 = vpop.eup %3056 }
 0xbf8   :  { %v1322_v38 = vadd.f32 1.0, %v3057_v37  ;;  %v3059_v41 = vpop.eup %3058 }
 0xbf9   :  { %v1417_v42 = vadd.f32 1.0, %v3059_v41 }
 0xbfa   :  { %3060 = vrcp.f32 %v1322_v38 }
 0xbfb   :  { %3062 = vrcp.f32 %v1417_v42 }
 0xc07   :  { %v3061_v43 = vpop.eup %3060 }
 0xc08   :  { %v3063_v46 = vpop.eup %3062  ;;  %v1326_v49 = vmul.f32 %v3061_v43, %v3563_v11 }
 0xc09   :  { %v1421_v60 = vmul.f32 %v3063_v46, %v3567_v14  ;;  %v262_v14 = vcombine.high %v3375_v39, %v3251_v0 }
 0xc63   :  { %v1329_v44 = vpop.permute.xlu1 %1328 }
 0xc64   :  { %v1331_v45 = vmul.f32 %v3061_v43, %v1329_v44 }
 0xc66   :  { %1333 = vrot.lane.b32.xlu1 %v1331_v45, %s3256_s20 }
 0xc69   :  { %v1424_v47 = vpop.permute.xlu0 %1423 }
 0xc6a   :  { %v1426_v48 = vmul.f32 %v3063_v46, %v1424_v47 }
 0xc6c   :  { %1428 = vrot.lane.b32.xlu0 %v1426_v48, %s3256_s20 }
 0xcd8   :  { %v1334_v50 = vpop.permute.xlu1 %1333 }
 0xcd9   :  { %v3614_v58 = vadd.f32 %v1334_v50, %v1326_v49 }
 0xcdb   :  { %3064 = vtanh.f32 %v3614_v58 }
 0xcde   :  { %v1429_v61 = vpop.permute.xlu0 %1428 }
 0xcdf   :  { %v3618_v35 = vadd.f32 %v1429_v61, %v1421_v60 }
 0xce1   :  { %3066 = vtanh.f32 %v3618_v35 }
 0xce8   :  { %v3065_v62 = vpop.eup %3064 }
 0xce9   :  { %1339 = vrot.lane.b32.xlu1 %v3065_v62, %s3255_s3 }
 0xcee   :  { %v3067_v63 = vpop.eup %3066 }
 0xcef   :  { %1434 = vrot.lane.b32.xlu0 %v3067_v63, %s3255_s3 }
 0xd5b   :  { %v1340_v1 = vpop.permute.xlu1 %1339 }
 0xd5c   :  { %v1342_v3 = vmul.f32 %v3061_v43, %v1340_v1 }
 0xd5e   :  { %1514 = vrot.lane.b32.xlu1 %v1342_v3, %s3256_s20 }
 0xd61   :  { %v1435_v6 = vpop.permute.xlu0 %1434 }
 0xd62   :  { %v1437_v9 = vmul.f32 %v3063_v46, %v1435_v6 }
 0xd64   :  { %1439 = vrot.lane.b32.xlu0 %v1437_v9, %s3256_s20 }
 0xdd0   :  { %v1515_v10 = vpop.permute.xlu1 %1514 }
 0xdd1   :  { %2871 = vmatmul.mubr.msk.f32.vlgmr.msra.gmra.mxu1 %vm264_vm2, %v1515_v10 }
 0xdd2   :  { %2885 = vmatpush3.msra.mxu1 %v3384_v51  ;;  %2892 = vmatprep.mubr.msk.f32.mxu1 %vm3252_vm0, %v3251_v0 }
 0xdd3   :  { %2886 = vmatprep.subr.mxu1 %v3251_v0 }
 0xdd4   :  { %2887 = vmatpush3.msra.mxu1 %v3386_v52 }
 0xdd5   :  { %2888 = vmatprep.subr.mxu1 %v3251_v0 }
 0xdd6   :  { %v1440_v11 = vpop.permute.xlu0 %1439  ;;  %2889 = vmatpush3.msra.mxu1 %v3395_v55 }
 0xdd7   :  { %2860 = vmatmul.mubr.msk.f32.vlgmr.msra.gmra.mxu0 %vm264_vm2, %v1440_v11  ;;  %2890 = vmatprep.subr.mxu1 %v3251_v0 }
 0xdd8   :  { %2874 = vmatpush3.msra.mxu0 %v3330_v4  ;;  %2881 = vmatprep.mubr.msk.f32.mxu0 %vm3252_vm0, %v3251_v0 }
 0xdd9   :  { %2875 = vmatprep.subr.mxu0 %v3251_v0  ;;  %2891 = vmatpush3.msra.mxu1 %v3403_v57 }
 0xdda   :  { %2876 = vmatpush3.msra.mxu0 %v3335_v5  ;;  %2906 = vmatprep.subr.mxu1 %v3251_v0 }
 0xddb   :  { %2877 = vmatprep.subr.mxu0 %v3251_v0 }
 0xddc   :  { %2878 = vmatpush3.msra.mxu0 %v3345_v7 }
 0xddd   :  { %2879 = vmatprep.subr.mxu0 %v3251_v0 }
 0xdde   :  { %2880 = vmatpush3.msra.mxu0 %v3353_v8 }
 0xddf   :  { %2882 = vmatmul.mubr.msk.f32.vlgmr.msra.gmra.mxu0 %vm264_vm2, %v1440_v11  ;;  %2895 = vmatprep.subr.mxu0 %v3251_v0 }
 0xde0   :  { %2896 = vmatpush3.msra.mxu0 %v3388_v53  ;;  %2903 = vmatprep.mubr.msk.f32.mxu0 %vm3252_vm0, %v3251_v0 }
 0xde1   :  { %2897 = vmatprep.subr.mxu0 %v3251_v0 }
 0xde2   :  { %2898 = vmatpush3.msra.mxu0 %v3392_v54 }
 0xde3   :  { %2899 = vmatprep.subr.mxu0 %v3251_v0 }
 0xde4   :  { %2900 = vmatpush3.msra.mxu0 %v3398_v56 }
 0xde5   :  { %2901 = vmatprep.subr.mxu0 %v3251_v0 }
 0xde6   :  { %2902 = vmatpush3.msra.mxu0 %v3413_v59 }
 0xde7   :  { %2917 = vmatprep.subr.mxu0 %v3251_v0 }
 0xe91   :  { %v1584_v4 = vpop.f32.mrf.mxu1 }
 0xe93   :  { %v2872_v5 = vpop.f32.mrf.mxu1 }
 0xe97   :  { %v1509_v7 = vpop.f32.mrf.mxu0 }
 0xe98   :  { %v1510_v8 = vadd.f32 %v3451_v2, %v1509_v7 }
 0xe99   :  { %v2861_v12 = vpop.f32.mrf.mxu0 }
 0xe9a   :  { %v1588_v13 = vadd.f32 %v1584_v4, %v1510_v8 }
 0xe9c   :  { %3068 = vtanh.f32 %v1588_v13  ;;  %v2554_v20 = vmul.f32 -1.442695, %v1588_v13 }
 0xe9f   :  { %v1679_v15 = vpop.f32.mrf.mxu0 }
 0xea0   :  { %v1683_v16 = vadd.f32 %v1679_v15, %v262_v14 }
 0xea1   :  { %v2883_v17 = vpop.f32.mrf.mxu0 }
 0xea2   :  { %3070 = vtanh.f32 %v1683_v16  ;;  %v2556_v21 = vmul.f32 -1.442695, %v1683_v16 }
 0xea3   :  { %3072 = vpow2.f32 %v2554_v20 }
 0xea4   :  { %3074 = vpow2.f32 %v2556_v21 }
 0xea9   :  { %v3069_v18 = vpop.eup %3068 }
 0xeaa   :  { %1598 = vrot.lane.b32.xlu1 %v3069_v18, %s3255_s3 }
 0xeaf   :  { %v3071_v19 = vpop.eup %3070 }
 0xeb0   :  { %1693 = vrot.lane.b32.xlu0 %v3071_v19, %s3255_s3  ;;  %v3073_v22 = vpop.eup %3072 }
 0xeb1   :  { %v1592_v23 = vadd.f32 1.0, %v3073_v22  ;;  %v3075_v24 = vpop.eup %3074 }
 0xeb2   :  { %v1687_v25 = vadd.f32 1.0, %v3075_v24 }
 0xeb3   :  { %3076 = vrcp.f32 %v1592_v23 }
 0xeb4   :  { %3078 = vrcp.f32 %v1687_v25  ;;  %v3128_v25 = vld [vmem:[#allocation5 + $0x18] sm:$0xff] }
 0xec0   :  { %v3077_v39 = vpop.eup %3076 }
 0xec1   :  { %v3079_v28 = vpop.eup %3078  ;;  %v1596_v31 = vmul.f32 %v3077_v39, %v3614_v58 }
 0xec2   :  { %v1691_v34 = vmul.f32 %v3079_v28, %v3618_v35 }
 0xf1c   :  { %v1599_v26 = vpop.permute.xlu1 %1598 }
 0xf1d   :  { %v1601_v27 = vmul.f32 %v3077_v39, %v1599_v26 }
 0xf1f   :  { %1603 = vrot.lane.b32.xlu1 %v1601_v27, %s3256_s20  ;;  %v3130_v27 = vld [vmem:[#allocation5 + $0x8] sm:$0xff] }
 0xf22   :  { %v1694_v29 = vpop.permute.xlu0 %1693 }
 0xf23   :  { %v1696_v30 = vmul.f32 %v3079_v28, %v1694_v29  ;;  %v3132_v29 = vld [vmem:[#allocation7 + $0x18] sm:$0xff] }
 0xf25   :  { %1698 = vrot.lane.b32.xlu0 %v1696_v30, %s3256_s20  ;;  %v3133_v30 = vld [vmem:[#allocation7 + $0x10] sm:$0xff] }
 0xf91   :  { %v1604_v32 = vpop.permute.xlu1 %1603 }
 0xf92   :  { %v3666_v33 = vadd.f32 %v1604_v32, %v1596_v31  ;;  %v3134_v31 = vld [vmem:[#allocation7 + $0x8] sm:$0xff]  ;;  %v3135_v32 = vld [vmem:[#allocation7] sm:$0xff] }
 0xf94   :  { %3080 = vtanh.f32 %v3666_v33 }
 0xf97   :  { %v1699_v36 = vpop.permute.xlu0 %1698 }
 0xf98   :  { %v3670_v37 = vadd.f32 %v1699_v36, %v1691_v34 }
 0xf9a   :  { %3082 = vtanh.f32 %v3670_v37 }
 0xfa1   :  { %v3081_v38 = vpop.eup %3080 }
 0xfa2   :  { %1609 = vrot.lane.b32.xlu1 %v3081_v38, %s3255_s3 }
 0xfa7   :  { %v3083_v41 = vpop.eup %3082 }
 0xfa8   :  { %1704 = vrot.lane.b32.xlu0 %v3083_v41, %s3255_s3 }
0x1014   :  { %v1610_v42 = vpop.permute.xlu1 %1609 }
0x1015   :  { %v1612_v43 = vmul.f32 %v3077_v39, %v1610_v42  ;;  %v3129_v39 = vld [vmem:[#allocation5 + $0x10] sm:$0xff]  ;;  %v263_v42 = vcombine.high %v3377_v40, %v3251_v0 }
0x1017   :  { %1784 = vrot.lane.b32.xlu1 %v1612_v43, %s3256_s20 }
0x101a   :  { %v1705_v44 = vpop.permute.xlu0 %1704 }
0x101b   :  { %v1707_v45 = vmul.f32 %v3079_v28, %v1705_v44  ;;  %v3131_v28 = vld [vmem:[#allocation5] sm:$0xff] }
0x101d   :  { %1709 = vrot.lane.b32.xlu0 %v1707_v45, %s3256_s20 }
0x1089   :  { %v1785_v46 = vpop.permute.xlu1 %1784 }
0x108a   :  { %2904 = vmatmul.mubr.msk.f32.vlgmr.msra.gmra.mxu0 %vm264_vm2, %v1785_v46 }
0x108b   :  { %2918 = vmatpush3.msra.mxu0 %v3384_v51  ;;  %2925 = vmatprep.mubr.msk.f32.mxu0 %vm3252_vm0, %v3251_v0  ;;  %v3690_v51 = vld [vmem:[%s3817_s2 + $0x18] sm:$0xff] }
0x108c   :  { %2919 = vmatprep.subr.mxu0 %v3251_v0 }
0x108d   :  { %2920 = vmatpush3.msra.mxu0 %v3386_v52  ;;  %v3700_v52 = vld [vmem:[%s3817_s2 + $0x10] sm:$0xff] }
0x108e   :  { %2921 = vmatprep.subr.mxu0 %v3251_v0 }
0x108f   :  { %v1710_v47 = vpop.permute.xlu0 %1709  ;;  %2922 = vmatpush3.msra.mxu0 %v3395_v55  ;;  %v3708_v55 = vld [vmem:[%s3817_s2 + $0x8] sm:$0xff] }
0x1090   :  { %2893 = vmatmul.mubr.msk.f32.vlgmr.msra.gmra.mxu1 %vm264_vm2, %v1710_v47  ;;  %2923 = vmatprep.subr.mxu0 %v3251_v0 }
0x1091   :  { %2907 = vmatpush3.msra.mxu1 %v3690_v51  ;;  %2914 = vmatprep.mubr.msk.f32.mxu1 %vm3252_vm0, %v3251_v0 }
0x1092   :  { %2908 = vmatprep.subr.mxu1 %v3251_v0  ;;  %2924 = vmatpush3.msra.mxu0 %v3403_v57  ;;  %v3715_v57 = vld [vmem:[%s3817_s2] sm:$0xff] }
0x1093   :  { %2909 = vmatpush3.msra.mxu1 %v3700_v52  ;;  %2939 = vmatprep.subr.mxu0 %v3251_v0 }
0x1094   :  { %2910 = vmatprep.subr.mxu1 %v3251_v0 }
0x1095   :  { %2911 = vmatpush3.msra.mxu1 %v3708_v55 }
0x1096   :  { %2912 = vmatprep.subr.mxu1 %v3251_v0 }
0x1097   :  { %2913 = vmatpush3.msra.mxu1 %v3715_v57 }
0x1098   :  { %2915 = vmatmul.mubr.msk.f32.vlgmr.msra.gmra.mxu1 %vm264_vm2, %v1710_v47  ;;  %2928 = vmatprep.subr.mxu1 %v3251_v0 }
0x1099   :  { %2929 = vmatpush3.msra.mxu1 %v3388_v53  ;;  %2936 = vmatprep.mubr.msk.f32.mxu1 %vm3252_vm0, %v3251_v0 }
0x109a   :  { %2930 = vmatprep.subr.mxu1 %v3251_v0 }
0x109b   :  { %2931 = vmatpush3.msra.mxu1 %v3392_v54 }
0x109c   :  { %2932 = vmatprep.subr.mxu1 %v3251_v0 }
0x109d   :  { %2933 = vmatpush3.msra.mxu1 %v3398_v56 }
0x109e   :  { %2934 = vmatprep.subr.mxu1 %v3251_v0 }
0x109f   :  { %2935 = vmatpush3.msra.mxu1 %v3413_v59 }
0x10a0   :  { %2950 = vmatprep.subr.mxu1 %v3251_v0 }
0x114a   :  { %v1854_v48 = vpop.f32.mrf.mxu0 }
0x114c   :  { %v2905_v49 = vpop.f32.mrf.mxu0 }
0x1150   :  { %v1779_v53 = vpop.f32.mrf.mxu1 }
0x1151   :  { %v1780_v50 = vadd.f32 %v3451_v2, %v1779_v53 }
0x1152   :  { %v2894_v58 = vpop.f32.mrf.mxu1 }
0x1153   :  { %v1858_v60 = vadd.f32 %v1854_v48, %v1780_v50 }
0x1155   :  { %3084 = vtanh.f32 %v1858_v60  ;;  %v2559_v59 = vmul.f32 -1.442695, %v1858_v60 }
0x1158   :  { %v1949_v61 = vpop.f32.mrf.mxu1 }
0x1159   :  { %v1953_v54 = vadd.f32 %v1949_v61, %v3377_v40 }
0x115a   :  { %v2916_v35 = vpop.f32.mrf.mxu1 }
0x115b   :  { %3086 = vtanh.f32 %v1953_v54  ;;  %v2561_v63 = vmul.f32 -1.442695, %v1953_v54 }
0x115c   :  { %3088 = vpow2.f32 %v2559_v59 }
0x115d   :  { %3090 = vpow2.f32 %v2561_v63 }
0x1162   :  { %v3085_v56 = vpop.eup %3084 }
0x1163   :  { %1868 = vrot.lane.b32.xlu1 %v3085_v56, %s3255_s3 }
0x1168   :  { %v3087_v62 = vpop.eup %3086 }
0x1169   :  { %1963 = vrot.lane.b32.xlu0 %v3087_v62, %s3255_s3  ;;  %v3089_v1 = vpop.eup %3088 }
0x116a   :  { %v1862_v3 = vadd.f32 1.0, %v3089_v1  ;;  %v3091_v6 = vpop.eup %3090 }
0x116b   :  { %v1957_v9 = vadd.f32 1.0, %v3091_v6 }
0x116c   :  { %3092 = vrcp.f32 %v1862_v3 }
0x116d   :  { %3094 = vrcp.f32 %v1957_v9 }
0x1179   :  { %v3093_v10 = vpop.eup %3092 }
0x117a   :  { %v3095_v5 = vpop.eup %3094  ;;  %v1866_v12 = vmul.f32 %v3093_v10, %v3666_v33 }
0x117b   :  { %v1961_v15 = vmul.f32 %v3095_v5, %v3670_v37 }
0x11d5   :  { %v1869_v11 = vpop.permute.xlu1 %1868 }
0x11d6   :  { %v1871_v4 = vmul.f32 %v3093_v10, %v1869_v11 }
0x11d8   :  { %1873 = vrot.lane.b32.xlu1 %v1871_v4, %s3256_s20 }
0x11db   :  { %v1964_v7 = vpop.permute.xlu0 %1963 }
0x11dc   :  { %v1966_v8 = vmul.f32 %v3095_v5, %v1964_v7 }
0x11de   :  { %1968 = vrot.lane.b32.xlu0 %v1966_v8, %s3256_s20 }
0x124a   :  { %v1874_v13 = vpop.permute.xlu1 %1873 }
0x124b   :  { %v3737_v14 = vadd.f32 %v1874_v13, %v1866_v12  ;;  %v3136_v12 = vld [vmem:[#allocation8] ss:$0 sm:$0xff] }
0x124d   :  { %3096 = vtanh.f32 %v3737_v14 }
0x1250   :  { %v1969_v16 = vpop.permute.xlu0 %1968 }
0x1251   :  { %v3741_v17 = vadd.f32 %v1969_v16, %v1961_v15 }
0x1253   :  { %3098 = vtanh.f32 %v3741_v17 }
0x125a   :  { %v3097_v18 = vpop.eup %3096 }
0x125b   :  { %1879 = vrot.lane.b32.xlu1 %v3097_v18, %s3255_s3 }
0x1260   :  { %v3099_v19 = vpop.eup %3098 }
0x1261   :  { %1974 = vrot.lane.b32.xlu0 %v3099_v19, %s3255_s3 }
0x12cd   :  { %v1880_v20 = vpop.permute.xlu1 %1879 }
0x12ce   :  { %v1882_v21 = vmul.f32 %v3093_v10, %v1880_v20 }
0x12d0   :  { %2054 = vrot.lane.b32.xlu1 %v1882_v21, %s3256_s20 }
0x12d3   :  { %v1975_v22 = vpop.permute.xlu0 %1974 }
0x12d4   :  { %v1977_v23 = vmul.f32 %v3095_v5, %v1975_v22 }
0x12d6   :  { %1979 = vrot.lane.b32.xlu0 %v1977_v23, %s3256_s20 }
0x1342   :  { %v2055_v24 = vpop.permute.xlu1 %2054 }
0x1343   :  { %2937 = vmatmul.mubr.msk.f32.vlgmr.msra.gmra.mxu1 %vm264_vm2, %v2055_v24 }
0x1344   :  { %2951 = vmatpush3.msra.mxu1 %v3128_v25  ;;  %2958 = vmatprep.mubr.msk.f32.mxu1 %vm3252_vm0, %v3251_v0 }
0x1345   :  { %2952 = vmatprep.subr.mxu1 %v3251_v0 }
0x1346   :  { %2953 = vmatpush3.msra.mxu1 %v3129_v39  ;;  %v2426_v39 = vld [vmem:[%s3822_s7 + $0x18] sm:$0xff] }
0x1347   :  { %2954 = vmatprep.subr.mxu1 %v3251_v0 }
0x1348   :  { %v1980_v26 = vpop.permute.xlu0 %1979  ;;  %2955 = vmatpush3.msra.mxu1 %v3130_v27  ;;  %v2424_v27 = vld [vmem:[%s3822_s7 + $0x8] sm:$0xff] }
0x1349   :  { %2926 = vmatmul.mubr.msk.f32.vlgmr.msra.gmra.mxu0 %vm264_vm2, %v1980_v26  ;;  %2956 = vmatprep.subr.mxu1 %v3251_v0 }
0x134a   :  { %2940 = vmatpush3.msra.mxu0 %v3690_v51  ;;  %2947 = vmatprep.mubr.msk.f32.mxu0 %vm3252_vm0, %v3251_v0 }
0x134b   :  { %2941 = vmatprep.subr.mxu0 %v3251_v0  ;;  %2957 = vmatpush3.msra.mxu1 %v3131_v28  ;;  %v2423_v28 = vld [vmem:[%s3822_s7] sm:$0xff] }
0x134c   :  { %2942 = vmatpush3.msra.mxu0 %v3700_v52  ;;  %2972 = vmatprep.subr.mxu1 %v3251_v0 }
0x134d   :  { %2943 = vmatprep.subr.mxu0 %v3251_v0 }
0x134e   :  { %2944 = vmatpush3.msra.mxu0 %v3708_v55 }
0x134f   :  { %2945 = vmatprep.subr.mxu0 %v3251_v0 }
0x1350   :  { %2946 = vmatpush3.msra.mxu0 %v3715_v57 }
0x1351   :  { %2948 = vmatmul.mubr.msk.f32.vlgmr.msra.gmra.mxu0 %vm264_vm2, %v1980_v26  ;;  %2961 = vmatprep.subr.mxu0 %v3251_v0  ;;  %v2425_v26 = vld [vmem:[%s3822_s7 + $0x10] sm:$0xff]  ;;  %s2517_s7 = sshll.u32 %s3257_s13, 4  ;;  %s2518_s7 = int_to_ptr.vmem [resolvable:$true] %s2517_s7 }
0x1352   :  { %2962 = vmatpush3.msra.mxu0 %v3132_v29  ;;  %2969 = vmatprep.mubr.msk.f32.mxu0 %vm3252_vm0, %v3251_v0  ;;  %s3217_s14 = scalar_lea.vmem %s2518_s7, 32  ;;  %p3222_p7 = scmp.lt.s32.totalorder %s2518_s7, %s2518_s7 }
0x1353   :  { %2963 = vmatprep.subr.mxu0 %v3251_v0  ;;  %p3218_p6 = scmp.ne.s32.totalorder %s2518_s7, %s3217_s14  ;;  %p3223_p8 = scmp.lt.s32.totalorder %s3217_s14, %s3217_s14 }
0x1354   :  { %2964 = vmatpush3.msra.mxu0 %v3133_v30 }
0x1355   :  { %2965 = vmatprep.subr.mxu0 %v3251_v0  ;;  %p3224_p9 = por %p3223_p8, %p3222_p7 }
0x1356   :  { %2966 = vmatpush3.msra.mxu0 %v3134_v31 }
0x1357   :  { %2967 = vmatprep.subr.mxu0 %v3251_v0  ;;  %p3225_p10 = pnand %p3224_p9, %p3218_p6 }
0x1358   :  { %2968 = vmatpush3.msra.mxu0 %v3135_v32 }
0x1403   :  { %v2124_v33 = vpop.f32.mrf.mxu1 }
0x1405   :  { %v2938_v34 = vpop.f32.mrf.mxu1 }
0x1409   :  { %v2049_v36 = vpop.f32.mrf.mxu0 }
0x140a   :  { %v2050_v37 = vadd.f32 %v3451_v2, %v2049_v36 }
0x140b   :  { %v2927_v38 = vpop.f32.mrf.mxu0 }
0x140c   :  { %v2128_v41 = vadd.f32 %v2124_v33, %v2050_v37  ;;  %v2570_v33 = vld [vmem:[%s3823_s8] ss:$0 sm:$0xff] }
0x140e   :  { %3100 = vtanh.f32 %v2128_v41  ;;  %v2564_v51 = vmul.f32 -1.442695, %v2128_v41 }
0x1411   :  { %v2219_v43 = vpop.f32.mrf.mxu0 }
0x1412   :  { %v2223_v44 = vadd.f32 %v2219_v43, %v263_v42 }
0x1413   :  { %v2949_v45 = vpop.f32.mrf.mxu0 }
0x1414   :  { %3102 = vtanh.f32 %v2223_v44  ;;  %v2566_v52 = vmul.f32 -1.442695, %v2223_v44 }
0x1415   :  { %3104 = vpow2.f32 %v2564_v51 }
0x1416   :  { %3106 = vpow2.f32 %v2566_v52 }
0x141b   :  { %v3101_v46 = vpop.eup %3100 }
0x141c   :  { %2138 = vrot.lane.b32.xlu1 %v3101_v46, %s3255_s3 }
0x1421   :  { %v3103_v47 = vpop.eup %3102 }
0x1422   :  { %2233 = vrot.lane.b32.xlu0 %v3103_v47, %s3255_s3  ;;  %v3105_v2 = vpop.eup %3104 }
0x1423   :  { %v2132_v55 = vadd.f32 1.0, %v3105_v2  ;;  %v3107_v57 = vpop.eup %3106 }
0x1424   :  { %v2227_v48 = vadd.f32 1.0, %v3107_v57 }
0x1425   :  { %3108 = vrcp.f32 %v2132_v55 }
0x1426   :  { %3110 = vrcp.f32 %v2227_v48 }
0x1432   :  { %v3109_v40 = vpop.eup %3108 }
0x1433   :  { %v3111_v50 = vpop.eup %3110  ;;  %v2136_v61 = vmul.f32 %v3109_v40, %v3737_v14 }
0x1434   :  { %v2231_v56 = vmul.f32 %v3111_v50, %v3741_v17 }
0x148e   :  { %v2139_v49 = vpop.permute.xlu1 %2138 }
0x148f   :  { %v2141_v53 = vmul.f32 %v3109_v40, %v2139_v49 }
0x1491   :  { %2143 = vrot.lane.b32.xlu1 %v2141_v53, %s3256_s20 }
0x1494   :  { %v2234_v58 = vpop.permute.xlu0 %2233 }
0x1495   :  { %v2236_v60 = vmul.f32 %v3111_v50, %v2234_v58 }
0x1497   :  { %2238 = vrot.lane.b32.xlu0 %v2236_v60, %s3256_s20 }
0x1503   :  { %v2144_v54 = vpop.permute.xlu1 %2143 }
0x1504   :  { %v2146_v35 = vadd.f32 %v2144_v54, %v2136_v61 }
0x1506   :  { %3112 = vtanh.f32 %v2146_v35 }
0x1509   :  { %v2239_v62 = vpop.permute.xlu0 %2238 }
0x150a   :  { %v2241_v59 = vadd.f32 %v2239_v62, %v2231_v56 }
0x150c   :  { %3114 = vtanh.f32 %v2241_v59 }
0x1513   :  { %v3113_v63 = vpop.eup %3112 }
0x1514   :  { %2149 = vrot.lane.b32.xlu1 %v3113_v63, %s3255_s3 }
0x1519   :  { %v3115_v1 = vpop.eup %3114 }
0x151a   :  { %2244 = vrot.lane.b32.xlu0 %v3115_v1, %s3255_s3 }
0x1586   :  { %v2150_v3 = vpop.permute.xlu1 %2149 }
0x1587   :  { %v2152_v6 = vmul.f32 %v3109_v40, %v2150_v3 }
0x1589   :  { %2324 = vrot.lane.b32.xlu1 %v2152_v6, %s3256_s20 }
0x158c   :  { %v2245_v9 = vpop.permute.xlu0 %2244 }
0x158d   :  { %v2247_v10 = vmul.f32 %v3111_v50, %v2245_v9 }
0x158f   :  { %2249 = vrot.lane.b32.xlu0 %v2247_v10, %s3256_s20 }
0x15fb   :  { %v2325_v11 = vpop.permute.xlu1 %2324 }
0x15fc   :  { %2970 = vmatmul.mubr.msk.f32.vlgmr.msra.gmra.mxu0 %vm264_vm2, %v2325_v11 }
0x1601   :  { %v2250_v4 = vpop.permute.xlu0 %2249 }
0x1602   :  { %2959 = vmatmul.mubr.msk.f32.vlgmr.msra.gmra.mxu1 %vm264_vm2, %v2250_v4 }
0x1603   :  { %2980 = vmatprep.mubr.msk.f32.mxu1 %vm3252_vm0, %v3251_v0  ;;  %2973 = vmatpush3.msra.mxu1 %v2426_v39 }
0x1604   :  { %2974 = vmatprep.subr.mxu1 %v3251_v0 }
0x1605   :  { %2975 = vmatpush3.msra.mxu1 %v2425_v26 }
0x1606   :  { %2976 = vmatprep.subr.mxu1 %v3251_v0 }
0x1607   :  { %2977 = vmatpush3.msra.mxu1 %v2424_v27 }
0x1608   :  { %2978 = vmatprep.subr.mxu1 %v3251_v0 }
0x1609   :  { %2979 = vmatpush3.msra.mxu1 %v2423_v28 }
0x16bc   :  { %v2394_v5 = vpop.f32.mrf.mxu0 }
0x16be   :  { %v2971_v7 = vpop.f32.mrf.mxu0 }
0x16c2   :  { %v2319_v8 = vpop.f32.mrf.mxu1 }
0x16c3   :  { %v2320_v13 = vadd.f32 %v3136_v12, %v2319_v8 }
0x16c4   :  { %v2960_v14 = vpop.f32.mrf.mxu1 }
0x16c5   :  { %v2398_v15 = vadd.f32 %v2394_v5, %v2320_v13 }
0x16c7   :  { %3116 = vtanh.f32 %v2398_v15  ;;  %v2569_v17 = vmul.f32 -1.442695, %v2398_v15 }
0x16c9   :  { %3118 = vpow2.f32 %v2569_v17 }
0x16d4   :  { %v3117_v16 = vpop.eup %3116 }
0x16d5   :  { %2408 = vrot.lane.b32.xlu0 %v3117_v16, %s3255_s3 }
0x16d6   :  { %v3119_v18 = vpop.eup %3118 }
0x16d7   :  { %v2402_v19 = vadd.f32 1.0, %v3119_v18 }
0x16d9   :  { %3120 = vrcp.f32 %v2402_v19 }
0x16e6   :  { %v3121_v20 = vpop.eup %3120 }
0x16e7   :  { %v2406_v23 = vmul.f32 %v3121_v20, %v2146_v35 }
0x1747   :  { %v2409_v21 = vpop.permute.xlu0 %2408 }
0x1748   :  { %v2411_v22 = vmul.f32 %v3121_v20, %v2409_v21 }
0x174a   :  { %2413 = vrot.lane.b32.xlu1 %v2411_v22, %s3256_s20 }
0x17bc   :  { %v2414_v24 = vpop.permute.xlu1 %2413 }
0x17bd   :  { %v2416_v25 = vadd.f32 %v2414_v24, %v2406_v23 }
0x17bf   :  { %3122 = vtanh.f32 %v2416_v25 }
0x17cc   :  { %v3123_v29 = vpop.eup %3122 }
0x17cd   :  { %2419 = vrot.lane.b32.xlu0 %v3123_v29, %s3255_s3 }
0x183f   :  { %v2420_v30 = vpop.permute.xlu0 %2419 }
0x1840   :  { %v2422_v31 = vmul.f32 %v3121_v20, %v2420_v30 }
0x1842   :  { %2435 = vrot.lane.b32.xlu1 %v2422_v31, %s3256_s20 }
0x18b4   :  { %v2436_v32 = vpop.permute.xlu1 %2435 }
0x18b5   :  { %2981 = vmatmul.mubr.msk.f32.vlgmr.msra.gmra.mxu1 %vm264_vm2, %v2436_v32 }
0x1975   :  { %v2505_v34 = vpop.f32.mrf.mxu1 }
0x1976   :  { %v2506_v0 = vadd.f32 %v2570_v33, %v2505_v34 }
0x1977   :  { %v2982_v36 = vpop.f32.mrf.mxu1 }
0x1978   :  { %2510 = vst.msk [vmem:[#allocation10] sm:$0x3] %vm2509_vm3, %v2506_v0 }
0x1979   :  { %3228 = shalt.err (!%p3225_p10)
}
0x197a   :  { %2520 = dma.vmem_to_hbm [thread:$0]  %s2518_s7, 32, %s3824_s9, [#allocation4]  }
0x197b   :  { %3243 = dma.done.wait [#allocation4], 32  }
0x197c   :  { %3244 = vsyncadd [#allocation4], 4294967264 }
0x197d   :  { %2524 = vsyncpa [#allocation3], 1 }
0x197e   :  { %2525 = vsyncpa [#allocation6], 1 }
0x197f   :  { %2526 = vsyncpa [#allocation9], 1 }
0x1980   :  { %2527 = vsyncpa [#allocation4], 1 }

</bundles_post_ra>
